<compile_context>
chip_gen: v7x
topology: tpu7x:2x2x1
jax: 0.10.0
libtpu: 0.0.40
codegen_flags: <defaults>
</compile_context>

<pallas_src>
import functools

import jax
import jax.numpy as jnp
from jax.experimental import pallas as pl
from jax.experimental.pallas import tpu as pltpu

LEAK = 0.05   # LeakyReLU negative slope
KSIZE = 3     # filter_size of the PyTorch module (pad=2 then crop 1 == pad=1 conv)


def _eye(n, k=0):
    return jnp.eye(n, n, k=k, dtype=jnp.float32)


# ---------------------------------------------------------------------------
# Pallas kernel: one full multi-scale layer, one sample per grid step.
# All operands are lane-dense 2-D tiles; the only ops are MXU dots and VPU
# elementwise, so nothing relayouts inside the kernel.
# ---------------------------------------------------------------------------
def _make_layer_kernel(H0, W0, Cin, Cout, n_scales):
    S = n_scales

    def kernel(*refs):
        x_ref = refs[0]          # (1, H0, W0*Cin)
        o_ref = refs[-1]         # (1, H0, W0*Cout)
        consts = refs[1:-1]      # per-scale constant matrices (see wrapper)

        x0 = x_ref[0]            # (H0, W0*Cin), W*C on lanes
        idx = 0
        accum = None
        for s in range(S - 1, -1, -1):
            Hs, Ws = H0 // (2 ** s), W0 // (2 ** s)

            # ---- downsample by 2**s (mean pool) as two matmuls ----
            if s > 0:
                Ph = consts[idx][...]        # (Hs, H0)
                Pw = consts[idx + 1][...]    # (W0*Cin, Ws*Cin)
                idx += 2
                xs = jnp.dot(
                    jnp.dot(Ph, x0, preferred_element_type=jnp.float32),
                    Pw, preferred_element_type=jnp.float32)
            else:
                xs = x0                      # (Hs, Ws*Cin)

            # ---- 3x3 conv (pad=1) + bias + LeakyReLU ----
            Dup = consts[idx][...]           # (Hs, Hs): row h -> x[h-1] (0 at top)
            Ddn = consts[idx + 1][...]       # (Hs, Hs): row h -> x[h+1] (0 at bottom)
            Mt = consts[idx + 2][...]        # (Ws*Cin, Ws*Cout)  filter row 0
            Mm = consts[idx + 3][...]        # filter row 1
            Mb = consts[idx + 4][...]        # filter row 2
            bias = consts[idx + 5][...]      # (1, Ws*Cout)
            idx += 6

            x_prev = jnp.dot(Dup, xs, preferred_element_type=jnp.float32)
            x_next = jnp.dot(Ddn, xs, preferred_element_type=jnp.float32)
            y = (jnp.dot(x_prev, Mt, preferred_element_type=jnp.float32)
                 + jnp.dot(xs, Mm, preferred_element_type=jnp.float32)
                 + jnp.dot(x_next, Mb, preferred_element_type=jnp.float32)
                 + bias)
            y = jnp.where(y > 0, y, LEAK * y)            # LeakyReLU(0.05)

            accum = y if accum is None else accum + y     # (Hs, Ws*Cout)

            # ---- nearest-neighbour 2x upsample as two matmuls ----
            if s > 0:
                Uh = consts[idx][...]        # (2*Hs, Hs)
                Uw = consts[idx + 1][...]    # (Ws*Cout, 2*Ws*Cout)
                idx += 2
                accum = jnp.dot(
                    jnp.dot(Uh, accum, preferred_element_type=jnp.float32),
                    Uw, preferred_element_type=jnp.float32)

        o_ref[0] = (accum * (1.0 / S)).astype(o_ref.dtype)

    return kernel


# ---------------------------------------------------------------------------
# Wrapper for one MultiScaleConvolution layer.
# ---------------------------------------------------------------------------
def multi_scale_layer(x_flat, ws, bs, *, H0, W0, Cin, Cout, n_scales):
    """x_flat: (N, H0, W0*Cin) float32 lane-dense activation."""
    N = x_flat.shape[0]
    S = n_scales
    assert H0 % (2 ** (S - 1)) == 0 and W0 % (2 ** (S - 1)) == 0

    consts = []
    in_specs = [pl.BlockSpec((1, H0, W0 * Cin), lambda n: (n, 0, 0))]

    def add_const(a):
        a = jnp.asarray(a, jnp.float32)
        consts.append(a)
        in_specs.append(pl.BlockSpec(a.shape, lambda n: (0, 0)))

    for s in range(S - 1, -1, -1):
        p = 2 ** s
        Hs, Ws = H0 // p, W0 // p

        if s > 0:   # mean-pool matrices (rows, then columns-with-channels)
            Ph = jnp.repeat(_eye(Hs), p, axis=1) / p                 # (Hs, H0)
            Pw = jnp.repeat(_eye(Ws), p, axis=1) / p                 # (Ws, W0)
            add_const(Ph)
            add_const(jnp.kron(Pw.T, _eye(Cin)))                     # (W0*Cin, Ws*Cin)

        # zero-padded +-1 row-shift matrices
        add_const(_eye(Hs, k=-1))                                    # x[h-1]
        add_const(_eye(Hs, k=1))                                     # x[h+1]

        # banded conv matrices: M_dh[(w+dw-1)*Cin+ci, w*Cout+co] = w[dh,dw,ci,co]
        w = jnp.asarray(ws[s], jnp.float32)                          # (3,3,Cin,Cout) HWIO
        for dh in range(KSIZE):
            M = sum(jnp.kron(_eye(Ws, k=1 - dw), w[dh, dw]) for dw in range(KSIZE))
            add_const(M)                                             # (Ws*Cin, Ws*Cout)

        add_const(jnp.tile(jnp.asarray(bs[s], jnp.float32), Ws).reshape(1, Ws * Cout))

        if s > 0:   # 2x nearest-neighbour upsample matrices
            Rh = jnp.repeat(_eye(Hs), 2, axis=0)                     # (2Hs, Hs)
            Rw = jnp.repeat(_eye(Ws), 2, axis=0)                     # (2Ws, Ws)
            add_const(Rh)
            add_const(jnp.kron(Rw.T, _eye(Cout)))                    # (Ws*Cout, 2Ws*Cout)

    kernel = _make_layer_kernel(H0, W0, Cin, Cout, S)
    return pl.pallas_call(
        kernel,
        out_shape=jax.ShapeDtypeStruct((N, H0, W0 * Cout), jnp.float32),
        grid=(N,),
        in_specs=in_specs,
        out_specs=pl.BlockSpec((1, H0, W0 * Cout), lambda n: (n, 0, 0)),
        compiler_params=pltpu.CompilerParams(
            dimension_semantics=("parallel",)),
    )(x_flat, *consts)


@functools.partial(jax.jit, static_argnums=(2, 3))
def multi_layer_forward(x_nchw, params, n_scales, n_hidden):
    """params: per layer a tuple (list_of_HWIO_weights, list_of_biases), one per scale."""
    N, C, H, W = x_nchw.shape
    z = jnp.transpose(x_nchw, (0, 2, 3, 1)).astype(jnp.float32)      # NCHW -> NHWC
    z = z.reshape(N, H, W * C)                                       # lane-dense (W*C)
    cin = C
    for (ws, bs) in params:
        z = multi_scale_layer(z, ws, bs, H0=H, W0=W, Cin=cin, Cout=n_hidden,
                              n_scales=n_scales)
        cin = n_hidden
    z = z.reshape(N, H, W, n_hidden)
    return jnp.transpose(z, (0, 3, 1, 2))                            # back to NCHW


# ---------------------------------------------------------------------------
# Pure-JAX reference (for correctness check of the Pallas path).
# ---------------------------------------------------------------------------
def _ref_layer(x_nhwc, ws, bs, n_scales):
    N, H0, W0, Cin = x_nhwc.shape
    accum = None
    for s in range(n_scales - 1, -1, -1):
        p = 2 ** s
        if s == 0:
            xd = x_nhwc
        else:
            xd = x_nhwc.reshape(N, H0 // p, p, W0 // p, p, Cin).mean(axis=(2, 4))
        y = jax.lax.conv_general_dilated(
            xd, ws[s], window_strides=(1, 1), padding=((1, 1), (1, 1)),
            dimension_numbers=('NHWC', 'HWIO', 'NHWC'))
        y = y + bs[s]
        y = jnp.where(y > 0, y, LEAK * y)
        accum = y if accum is None else accum + y
        if s > 0:
            accum = jnp.repeat(jnp.repeat(accum, 2, axis=1), 2, axis=2)
    return accum / n_scales


def _ref_forward(x_nchw, params, n_scales):
    z = jnp.transpose(x_nchw, (0, 2, 3, 1)).astype(jnp.float32)
    for (ws, bs) in params:
        z = _ref_layer(z, ws, bs, n_scales)
    return jnp.transpose(z, (0, 3, 1, 2))


if __name__ == "__main__":
    # small shapes consistent with the module
    n_layers, n_hidden, spatial_width, n_colors, n_scales = 2, 8, 16, 4, 2
    batch = 2

    key = jax.random.PRNGKey(0)
    params = []
    for layer in range(n_layers):
        cin = n_colors if layer == 0 else n_hidden
        ws, bs = [], []
        for _ in range(n_scales):
            key, kw, kb = jax.random.split(key, 3)
            ws.append(0.1 * jax.random.normal(kw, (KSIZE, KSIZE, cin, n_hidden),
                                              jnp.float32))
            bs.append(0.1 * jax.random.normal(kb, (n_hidden,), jnp.float32))
        params.append((ws, bs))

    key, kx = jax.random.split(key)
    x = jax.random.normal(kx, (batch, n_colors, spatial_width, spatial_width),
                          jnp.float32)

    out = multi_layer_forward(x, params, n_scales, n_hidden)
    out = jax.block_until_ready(out)

    ref = jax.block_until_ready(_ref_forward(x, params, n_scales))

    assert out.shape == (batch, n_hidden, spatial_width, spatial_width), out.shape
    err = float(jnp.max(jnp.abs(out - ref)))
    assert err < 1e-3, err
    print("KERNEL_OK")
</pallas_src>

<mosaic_0001>
module attributes {stable_mosaic.version = 11 : i64} {
  func.func @kernel(%arg0: i32, %arg1: memref<1x16x64xf32, #tpu.memory_space<vmem>>, %arg2: memref<8x16xf32, #tpu.memory_space<vmem>>, %arg3: memref<64x32xf32, #tpu.memory_space<vmem>>, %arg4: memref<8x8xf32, #tpu.memory_space<vmem>>, %arg5: memref<8x8xf32, #tpu.memory_space<vmem>>, %arg6: memref<32x64xf32, #tpu.memory_space<vmem>>, %arg7: memref<32x64xf32, #tpu.memory_space<vmem>>, %arg8: memref<32x64xf32, #tpu.memory_space<vmem>>, %arg9: memref<1x64xf32, #tpu.memory_space<vmem>>, %arg10: memref<16x8xf32, #tpu.memory_space<vmem>>, %arg11: memref<64x128xf32, #tpu.memory_space<vmem>>, %arg12: memref<16x16xf32, #tpu.memory_space<vmem>>, %arg13: memref<16x16xf32, #tpu.memory_space<vmem>>, %arg14: memref<64x128xf32, #tpu.memory_space<vmem>>, %arg15: memref<64x128xf32, #tpu.memory_space<vmem>>, %arg16: memref<64x128xf32, #tpu.memory_space<vmem>>, %arg17: memref<1x128xf32, #tpu.memory_space<vmem>>, %arg18: memref<1x16x128xf32, #tpu.memory_space<vmem>>) attributes {dimension_semantics = [#tpu.dimension_semantics<parallel>], iteration_bounds = array<i64: 2>, scalar_prefetch = 0 : i64, scratch_operands = 0 : i64, tpu.core_type = #tpu.core_type<tc>, window_params = [{transform_indices = @transform_0, window_bounds = array<i64: 1, 16, 64>}, {pipeline_mode = #tpu.pipeline_mode<synchronous>, transform_indices = @transform_1, window_bounds = array<i64: 8, 16>}, {pipeline_mode = #tpu.pipeline_mode<synchronous>, transform_indices = @transform_2, window_bounds = array<i64: 64, 32>}, {pipeline_mode = #tpu.pipeline_mode<synchronous>, transform_indices = @transform_3, window_bounds = array<i64: 8, 8>}, {pipeline_mode = #tpu.pipeline_mode<synchronous>, transform_indices = @transform_4, window_bounds = array<i64: 8, 8>}, {pipeline_mode = #tpu.pipeline_mode<synchronous>, transform_indices = @transform_5, window_bounds = array<i64: 32, 64>}, {pipeline_mode = #tpu.pipeline_mode<synchronous>, transform_indices = @transform_6, window_bounds = array<i64: 32, 64>}, {pipeline_mode = #tpu.pipeline_mode<synchronous>, transform_indices = @transform_7, window_bounds = array<i64: 32, 64>}, {pipeline_mode = #tpu.pipeline_mode<synchronous>, transform_indices = @transform_8, window_bounds = array<i64: 1, 64>}, {pipeline_mode = #tpu.pipeline_mode<synchronous>, transform_indices = @transform_9, window_bounds = array<i64: 16, 8>}, {pipeline_mode = #tpu.pipeline_mode<synchronous>, transform_indices = @transform_10, window_bounds = array<i64: 64, 128>}, {pipeline_mode = #tpu.pipeline_mode<synchronous>, transform_indices = @transform_11, window_bounds = array<i64: 16, 16>}, {pipeline_mode = #tpu.pipeline_mode<synchronous>, transform_indices = @transform_12, window_bounds = array<i64: 16, 16>}, {pipeline_mode = #tpu.pipeline_mode<synchronous>, transform_indices = @transform_13, window_bounds = array<i64: 64, 128>}, {pipeline_mode = #tpu.pipeline_mode<synchronous>, transform_indices = @transform_14, window_bounds = array<i64: 64, 128>}, {pipeline_mode = #tpu.pipeline_mode<synchronous>, transform_indices = @transform_15, window_bounds = array<i64: 64, 128>}, {pipeline_mode = #tpu.pipeline_mode<synchronous>, transform_indices = @transform_16, window_bounds = array<i64: 1, 128>}, {transform_indices = @transform_17, window_bounds = array<i64: 1, 16, 128>}]} {
    %c0 = arith.constant 0 : index
    %c0_0 = arith.constant 0 : index
    %c0_1 = arith.constant 0 : index
    %0 = vector.load %arg1[%c0, %c0_0, %c0_1] : memref<1x16x64xf32, #tpu.memory_space<vmem>>, vector<1x16x64xf32>
    %1 = vector.shape_cast %0 : vector<1x16x64xf32> to vector<16x64xf32>
    %c0_2 = arith.constant 0 : index
    %c0_3 = arith.constant 0 : index
    %2 = vector.load %arg2[%c0_2, %c0_3] : memref<8x16xf32, #tpu.memory_space<vmem>>, vector<8x16xf32>
    %c0_4 = arith.constant 0 : index
    %c0_5 = arith.constant 0 : index
    %3 = vector.load %arg3[%c0_4, %c0_5] : memref<64x32xf32, #tpu.memory_space<vmem>>, vector<64x32xf32>
    %cst = arith.constant dense<0.000000e+00> : vector<8x64xf32>
    %4 = tpu.matmul %2, %1, %cst {dimension_numbers = #tpu.dot_dimension_numbers<[1], [0], [0], [1], [0, 0, 1, 1], [], []>} : vector<8x16xf32>, vector<16x64xf32>, vector<8x64xf32> -> vector<8x64xf32>
    %cst_6 = arith.constant dense<0.000000e+00> : vector<8x32xf32>
    %5 = tpu.matmul %4, %3, %cst_6 {dimension_numbers = #tpu.dot_dimension_numbers<[1], [0], [0], [1], [0, 0, 1, 1], [], []>} : vector<8x64xf32>, vector<64x32xf32>, vector<8x32xf32> -> vector<8x32xf32>
    %c0_7 = arith.constant 0 : index
    %c0_8 = arith.constant 0 : index
    %6 = vector.load %arg4[%c0_7, %c0_8] : memref<8x8xf32, #tpu.memory_space<vmem>>, vector<8x8xf32>
    %c0_9 = arith.constant 0 : index
    %c0_10 = arith.constant 0 : index
    %7 = vector.load %arg5[%c0_9, %c0_10] : memref<8x8xf32, #tpu.memory_space<vmem>>, vector<8x8xf32>
    %c0_11 = arith.constant 0 : index
    %c0_12 = arith.constant 0 : index
    %8 = vector.load %arg6[%c0_11, %c0_12] : memref<32x64xf32, #tpu.memory_space<vmem>>, vector<32x64xf32>
    %c0_13 = arith.constant 0 : index
    %c0_14 = arith.constant 0 : index
    %9 = vector.load %arg7[%c0_13, %c0_14] : memref<32x64xf32, #tpu.memory_space<vmem>>, vector<32x64xf32>
    %c0_15 = arith.constant 0 : index
    %c0_16 = arith.constant 0 : index
    %10 = vector.load %arg8[%c0_15, %c0_16] : memref<32x64xf32, #tpu.memory_space<vmem>>, vector<32x64xf32>
    %c0_17 = arith.constant 0 : index
    %c0_18 = arith.constant 0 : index
    %11 = vector.load %arg9[%c0_17, %c0_18] : memref<1x64xf32, #tpu.memory_space<vmem>>, vector<1x64xf32>
    %cst_19 = arith.constant dense<0.000000e+00> : vector<8x32xf32>
    %12 = tpu.matmul %6, %5, %cst_19 {dimension_numbers = #tpu.dot_dimension_numbers<[1], [0], [0], [1], [0, 0, 1, 1], [], []>} : vector<8x8xf32>, vector<8x32xf32>, vector<8x32xf32> -> vector<8x32xf32>
    %cst_20 = arith.constant dense<0.000000e+00> : vector<8x32xf32>
    %13 = tpu.matmul %7, %5, %cst_20 {dimension_numbers = #tpu.dot_dimension_numbers<[1], [0], [0], [1], [0, 0, 1, 1], [], []>} : vector<8x8xf32>, vector<8x32xf32>, vector<8x32xf32> -> vector<8x32xf32>
    %cst_21 = arith.constant dense<0.000000e+00> : vector<8x64xf32>
    %14 = tpu.matmul %12, %8, %cst_21 {dimension_numbers = #tpu.dot_dimension_numbers<[1], [0], [0], [1], [0, 0, 1, 1], [], []>} : vector<8x32xf32>, vector<32x64xf32>, vector<8x64xf32> -> vector<8x64xf32>
    %cst_22 = arith.constant dense<0.000000e+00> : vector<8x64xf32>
    %15 = tpu.matmul %5, %9, %cst_22 {dimension_numbers = #tpu.dot_dimension_numbers<[1], [0], [0], [1], [0, 0, 1, 1], [], []>} : vector<8x32xf32>, vector<32x64xf32>, vector<8x64xf32> -> vector<8x64xf32>
    %16 = arith.addf %14, %15 : vector<8x64xf32>
    %cst_23 = arith.constant dense<0.000000e+00> : vector<8x64xf32>
    %17 = tpu.matmul %13, %10, %cst_23 {dimension_numbers = #tpu.dot_dimension_numbers<[1], [0], [0], [1], [0, 0, 1, 1], [], []>} : vector<8x32xf32>, vector<32x64xf32>, vector<8x64xf32> -> vector<8x64xf32>
    %18 = arith.addf %16, %17 : vector<8x64xf32>
    %19 = vector.broadcast %11 : vector<1x64xf32> to vector<8x64xf32>
    %20 = arith.addf %18, %19 : vector<8x64xf32>
    %cst_24 = arith.constant 0.000000e+00 : f32
    %21 = vector.broadcast %cst_24 : f32 to vector<8x64xf32>
    %22 = arith.cmpf ogt, %20, %21 : vector<8x64xf32>
    %cst_25 = arith.constant 5.000000e-02 : f32
    %23 = vector.broadcast %cst_25 : f32 to vector<8x64xf32>
    %24 = arith.mulf %23, %20 : vector<8x64xf32>
    %25 = arith.select %22, %20, %24 : vector<8x64xi1>, vector<8x64xf32>
    %c0_26 = arith.constant 0 : index
    %c0_27 = arith.constant 0 : index
    %26 = vector.load %arg10[%c0_26, %c0_27] : memref<16x8xf32, #tpu.memory_space<vmem>>, vector<16x8xf32>
    %c0_28 = arith.constant 0 : index
    %c0_29 = arith.constant 0 : index
    %27 = vector.load %arg11[%c0_28, %c0_29] : memref<64x128xf32, #tpu.memory_space<vmem>>, vector<64x128xf32>
    %cst_30 = arith.constant dense<0.000000e+00> : vector<16x64xf32>
    %28 = tpu.matmul %26, %25, %cst_30 {dimension_numbers = #tpu.dot_dimension_numbers<[1], [0], [0], [1], [0, 0, 1, 1], [], []>} : vector<16x8xf32>, vector<8x64xf32>, vector<16x64xf32> -> vector<16x64xf32>
    %cst_31 = arith.constant dense<0.000000e+00> : vector<16x128xf32>
    %29 = tpu.matmul %28, %27, %cst_31 {dimension_numbers = #tpu.dot_dimension_numbers<[1], [0], [0], [1], [0, 0, 1, 1], [], []>} : vector<16x64xf32>, vector<64x128xf32>, vector<16x128xf32> -> vector<16x128xf32>
    %c0_32 = arith.constant 0 : index
    %c0_33 = arith.constant 0 : index
    %30 = vector.load %arg12[%c0_32, %c0_33] : memref<16x16xf32, #tpu.memory_space<vmem>>, vector<16x16xf32>
    %c0_34 = arith.constant 0 : index
    %c0_35 = arith.constant 0 : index
    %31 = vector.load %arg13[%c0_34, %c0_35] : memref<16x16xf32, #tpu.memory_space<vmem>>, vector<16x16xf32>
    %c0_36 = arith.constant 0 : index
    %c0_37 = arith.constant 0 : index
    %32 = vector.load %arg14[%c0_36, %c0_37] : memref<64x128xf32, #tpu.memory_space<vmem>>, vector<64x128xf32>
    %c0_38 = arith.constant 0 : index
    %c0_39 = arith.constant 0 : index
    %33 = vector.load %arg15[%c0_38, %c0_39] : memref<64x128xf32, #tpu.memory_space<vmem>>, vector<64x128xf32>
    %c0_40 = arith.constant 0 : index
    %c0_41 = arith.constant 0 : index
    %34 = vector.load %arg16[%c0_40, %c0_41] : memref<64x128xf32, #tpu.memory_space<vmem>>, vector<64x128xf32>
    %c0_42 = arith.constant 0 : index
    %c0_43 = arith.constant 0 : index
    %35 = vector.load %arg17[%c0_42, %c0_43] : memref<1x128xf32, #tpu.memory_space<vmem>>, vector<1x128xf32>
    %cst_44 = arith.constant dense<0.000000e+00> : vector<16x64xf32>
    %36 = tpu.matmul %30, %1, %cst_44 {dimension_numbers = #tpu.dot_dimension_numbers<[1], [0], [0], [1], [0, 0, 1, 1], [], []>} : vector<16x16xf32>, vector<16x64xf32>, vector<16x64xf32> -> vector<16x64xf32>
    %cst_45 = arith.constant dense<0.000000e+00> : vector<16x64xf32>
    %37 = tpu.matmul %31, %1, %cst_45 {dimension_numbers = #tpu.dot_dimension_numbers<[1], [0], [0], [1], [0, 0, 1, 1], [], []>} : vector<16x16xf32>, vector<16x64xf32>, vector<16x64xf32> -> vector<16x64xf32>
    %cst_46 = arith.constant dense<0.000000e+00> : vector<16x128xf32>
    %38 = tpu.matmul %36, %32, %cst_46 {dimension_numbers = #tpu.dot_dimension_numbers<[1], [0], [0], [1], [0, 0, 1, 1], [], []>} : vector<16x64xf32>, vector<64x128xf32>, vector<16x128xf32> -> vector<16x128xf32>
    %cst_47 = arith.constant dense<0.000000e+00> : vector<16x128xf32>
    %39 = tpu.matmul %1, %33, %cst_47 {dimension_numbers = #tpu.dot_dimension_numbers<[1], [0], [0], [1], [0, 0, 1, 1], [], []>} : vector<16x64xf32>, vector<64x128xf32>, vector<16x128xf32> -> vector<16x128xf32>
    %40 = arith.addf %38, %39 : vector<16x128xf32>
    %cst_48 = arith.constant dense<0.000000e+00> : vector<16x128xf32>
    %41 = tpu.matmul %37, %34, %cst_48 {dimension_numbers = #tpu.dot_dimension_numbers<[1], [0], [0], [1], [0, 0, 1, 1], [], []>} : vector<16x64xf32>, vector<64x128xf32>, vector<16x128xf32> -> vector<16x128xf32>
    %42 = arith.addf %40, %41 : vector<16x128xf32>
    %43 = vector.broadcast %35 : vector<1x128xf32> to vector<16x128xf32>
    %44 = arith.addf %42, %43 : vector<16x128xf32>
    %cst_49 = arith.constant 0.000000e+00 : f32
    %45 = vector.broadcast %cst_49 : f32 to vector<16x128xf32>
    %46 = arith.cmpf ogt, %44, %45 : vector<16x128xf32>
    %cst_50 = arith.constant 5.000000e-02 : f32
    %47 = vector.broadcast %cst_50 : f32 to vector<16x128xf32>
    %48 = arith.mulf %47, %44 : vector<16x128xf32>
    %49 = arith.select %46, %44, %48 : vector<16x128xi1>, vector<16x128xf32>
    %50 = arith.addf %29, %49 : vector<16x128xf32>
    %cst_51 = arith.constant 5.000000e-01 : f32
    %51 = vector.broadcast %cst_51 : f32 to vector<16x128xf32>
    %52 = arith.mulf %50, %51 : vector<16x128xf32>
    %c0_52 = arith.constant 0 : index
    %c0_53 = arith.constant 0 : index
    %c0_54 = arith.constant 0 : index
    %53 = vector.load %arg18[%c0_52, %c0_53, %c0_54] : memref<1x16x128xf32, #tpu.memory_space<vmem>>, vector<1x16x128xf32>
    %54 = vector.shape_cast %53 : vector<1x16x128xf32> to vector<16x128xf32>
    %55 = vector.shape_cast %52 : vector<16x128xf32> to vector<1x16x128xf32>
    tpu.vector_store %arg18[%c0_52, %c0_53, %c0_54], %55 {strides = array<i32>} : memref<1x16x128xf32, #tpu.memory_space<vmem>>, vector<1x16x128xf32>,
    return
  }
  func.func @transform_0(%arg0: i32) -> (i32, i32, i32) {
    %c0_i32 = arith.constant 0 : i32
    %c0_i32_0 = arith.constant 0 : i32
    %c0_i32_1 = arith.constant 0 : i32
    return %arg0, %c0_i32, %c0_i32_0 : i32, i32, i32
  }
  func.func @transform_1(%arg0: i32) -> (i32, i32) {
    %c0_i32 = arith.constant 0 : i32
    %c0_i32_0 = arith.constant 0 : i32
    %c0_i32_1 = arith.constant 0 : i32
    return %c0_i32, %c0_i32_0 : i32, i32
  }
  func.func @transform_2(%arg0: i32) -> (i32, i32) {
    %c0_i32 = arith.constant 0 : i32
    %c0_i32_0 = arith.constant 0 : i32
    %c0_i32_1 = arith.constant 0 : i32
    return %c0_i32, %c0_i32_0 : i32, i32
  }
  func.func @transform_3(%arg0: i32) -> (i32, i32) {
    %c0_i32 = arith.constant 0 : i32
    %c0_i32_0 = arith.constant 0 : i32
    %c0_i32_1 = arith.constant 0 : i32
    return %c0_i32, %c0_i32_0 : i32, i32
  }
  func.func @transform_4(%arg0: i32) -> (i32, i32) {
    %c0_i32 = arith.constant 0 : i32
    %c0_i32_0 = arith.constant 0 : i32
    %c0_i32_1 = arith.constant 0 : i32
    return %c0_i32, %c0_i32_0 : i32, i32
  }
  func.func @transform_5(%arg0: i32) -> (i32, i32) {
    %c0_i32 = arith.constant 0 : i32
    %c0_i32_0 = arith.constant 0 : i32
    %c0_i32_1 = arith.constant 0 : i32
    return %c0_i32, %c0_i32_0 : i32, i32
  }
  func.func @transform_6(%arg0: i32) -> (i32, i32) {
    %c0_i32 = arith.constant 0 : i32
    %c0_i32_0 = arith.constant 0 : i32
    %c0_i32_1 = arith.constant 0 : i32
    return %c0_i32, %c0_i32_0 : i32, i32
  }
  func.func @transform_7(%arg0: i32) -> (i32, i32) {
    %c0_i32 = arith.constant 0 : i32
    %c0_i32_0 = arith.constant 0 : i32
    %c0_i32_1 = arith.constant 0 : i32
    return %c0_i32, %c0_i32_0 : i32, i32
  }
  func.func @transform_8(%arg0: i32) -> (i32, i32) {
    %c0_i32 = arith.constant 0 : i32
    %c0_i32_0 = arith.constant 0 : i32
    %c0_i32_1 = arith.constant 0 : i32
    return %c0_i32, %c0_i32_0 : i32, i32
  }
  func.func @transform_9(%arg0: i32) -> (i32, i32) {
    %c0_i32 = arith.constant 0 : i32
    %c0_i32_0 = arith.constant 0 : i32
    %c0_i32_1 = arith.constant 0 : i32
    return %c0_i32, %c0_i32_0 : i32, i32
  }
  func.func @transform_10(%arg0: i32) -> (i32, i32) {
    %c0_i32 = arith.constant 0 : i32
    %c0_i32_0 = arith.constant 0 : i32
    %c0_i32_1 = arith.constant 0 : i32
    return %c0_i32, %c0_i32_0 : i32, i32
  }
  func.func @transform_11(%arg0: i32) -> (i32, i32) {
    %c0_i32 = arith.constant 0 : i32
    %c0_i32_0 = arith.constant 0 : i32
    %c0_i32_1 = arith.constant 0 : i32
    return %c0_i32, %c0_i32_0 : i32, i32
  }
  func.func @transform_12(%arg0: i32) -> (i32, i32) {
    %c0_i32 = arith.constant 0 : i32
    %c0_i32_0 = arith.constant 0 : i32
    %c0_i32_1 = arith.constant 0 : i32
    return %c0_i32, %c0_i32_0 : i32, i32
  }
  func.func @transform_13(%arg0: i32) -> (i32, i32) {
    %c0_i32 = arith.constant 0 : i32
    %c0_i32_0 = arith.constant 0 : i32
    %c0_i32_1 = arith.constant 0 : i32
    return %c0_i32, %c0_i32_0 : i32, i32
  }
  func.func @transform_14(%arg0: i32) -> (i32, i32) {
    %c0_i32 = arith.constant 0 : i32
    %c0_i32_0 = arith.constant 0 : i32
    %c0_i32_1 = arith.constant 0 : i32
    return %c0_i32, %c0_i32_0 : i32, i32
  }
  func.func @transform_15(%arg0: i32) -> (i32, i32) {
    %c0_i32 = arith.constant 0 : i32
    %c0_i32_0 = arith.constant 0 : i32
    %c0_i32_1 = arith.constant 0 : i32
    return %c0_i32, %c0_i32_0 : i32, i32
  }
  func.func @transform_16(%arg0: i32) -> (i32, i32) {
    %c0_i32 = arith.constant 0 : i32
    %c0_i32_0 = arith.constant 0 : i32
    %c0_i32_1 = arith.constant 0 : i32
    return %c0_i32, %c0_i32_0 : i32, i32
  }
  func.func @transform_17(%arg0: i32) -> (i32, i32, i32) {
    %c0_i32 = arith.constant 0 : i32
    %c0_i32_0 = arith.constant 0 : i32
    %c0_i32_1 = arith.constant 0 : i32
    return %arg0, %c0_i32, %c0_i32_0 : i32, i32, i32
  }
}

module attributes {stable_mosaic.version = 11 : i64} {
  func.func @kernel(%arg0: i32, %arg1: memref<1x16x128xf32, #tpu.memory_space<vmem>>, %arg2: memref<8x16xf32, #tpu.memory_space<vmem>>, %arg3: memref<128x64xf32, #tpu.memory_space<vmem>>, %arg4: memref<8x8xf32, #tpu.memory_space<vmem>>, %arg5: memref<8x8xf32, #tpu.memory_space<vmem>>, %arg6: memref<64x64xf32, #tpu.memory_space<vmem>>, %arg7: memref<64x64xf32, #tpu.memory_space<vmem>>, %arg8: memref<64x64xf32, #tpu.memory_space<vmem>>, %arg9: memref<1x64xf32, #tpu.memory_space<vmem>>, %arg10: memref<16x8xf32, #tpu.memory_space<vmem>>, %arg11: memref<64x128xf32, #tpu.memory_space<vmem>>, %arg12: memref<16x16xf32, #tpu.memory_space<vmem>>, %arg13: memref<16x16xf32, #tpu.memory_space<vmem>>, %arg14: memref<128x128xf32, #tpu.memory_space<vmem>>, %arg15: memref<128x128xf32, #tpu.memory_space<vmem>>, %arg16: memref<128x128xf32, #tpu.memory_space<vmem>>, %arg17: memref<1x128xf32, #tpu.memory_space<vmem>>, %arg18: memref<1x16x128xf32, #tpu.memory_space<vmem>>) attributes {dimension_semantics = [#tpu.dimension_semantics<parallel>], iteration_bounds = array<i64: 2>, scalar_prefetch = 0 : i64, scratch_operands = 0 : i64, tpu.core_type = #tpu.core_type<tc>, window_params = [{transform_indices = @transform_0, window_bounds = array<i64: 1, 16, 128>}, {pipeline_mode = #tpu.pipeline_mode<synchronous>, transform_indices = @transform_1, window_bounds = array<i64: 8, 16>}, {pipeline_mode = #tpu.pipeline_mode<synchronous>, transform_indices = @transform_2, window_bounds = array<i64: 128, 64>}, {pipeline_mode = #tpu.pipeline_mode<synchronous>, transform_indices = @transform_3, window_bounds = array<i64: 8, 8>}, {pipeline_mode = #tpu.pipeline_mode<synchronous>, transform_indices = @transform_4, window_bounds = array<i64: 8, 8>}, {pipeline_mode = #tpu.pipeline_mode<synchronous>, transform_indices = @transform_5, window_bounds = array<i64: 64, 64>}, {pipeline_mode = #tpu.pipeline_mode<synchronous>, transform_indices = @transform_6, window_bounds = array<i64: 64, 64>}, {pipeline_mode = #tpu.pipeline_mode<synchronous>, transform_indices = @transform_7, window_bounds = array<i64: 64, 64>}, {pipeline_mode = #tpu.pipeline_mode<synchronous>, transform_indices = @transform_8, window_bounds = array<i64: 1, 64>}, {pipeline_mode = #tpu.pipeline_mode<synchronous>, transform_indices = @transform_9, window_bounds = array<i64: 16, 8>}, {pipeline_mode = #tpu.pipeline_mode<synchronous>, transform_indices = @transform_10, window_bounds = array<i64: 64, 128>}, {pipeline_mode = #tpu.pipeline_mode<synchronous>, transform_indices = @transform_11, window_bounds = array<i64: 16, 16>}, {pipeline_mode = #tpu.pipeline_mode<synchronous>, transform_indices = @transform_12, window_bounds = array<i64: 16, 16>}, {pipeline_mode = #tpu.pipeline_mode<synchronous>, transform_indices = @transform_13, window_bounds = array<i64: 128, 128>}, {pipeline_mode = #tpu.pipeline_mode<synchronous>, transform_indices = @transform_14, window_bounds = array<i64: 128, 128>}, {pipeline_mode = #tpu.pipeline_mode<synchronous>, transform_indices = @transform_15, window_bounds = array<i64: 128, 128>}, {pipeline_mode = #tpu.pipeline_mode<synchronous>, transform_indices = @transform_16, window_bounds = array<i64: 1, 128>}, {transform_indices = @transform_17, window_bounds = array<i64: 1, 16, 128>}]} {
    %c0 = arith.constant 0 : index
    %c0_0 = arith.constant 0 : index
    %c0_1 = arith.constant 0 : index
    %0 = vector.load %arg1[%c0, %c0_0, %c0_1] : memref<1x16x128xf32, #tpu.memory_space<vmem>>, vector<1x16x128xf32>
    %1 = vector.shape_cast %0 : vector<1x16x128xf32> to vector<16x128xf32>
    %c0_2 = arith.constant 0 : index
    %c0_3 = arith.constant 0 : index
    %2 = vector.load %arg2[%c0_2, %c0_3] : memref<8x16xf32, #tpu.memory_space<vmem>>, vector<8x16xf32>
    %c0_4 = arith.constant 0 : index
    %c0_5 = arith.constant 0 : index
    %3 = vector.load %arg3[%c0_4, %c0_5] : memref<128x64xf32, #tpu.memory_space<vmem>>, vector<128x64xf32>
    %cst = arith.constant dense<0.000000e+00> : vector<8x128xf32>
    %4 = tpu.matmul %2, %1, %cst {dimension_numbers = #tpu.dot_dimension_numbers<[1], [0], [0], [1], [0, 0, 1, 1], [], []>} : vector<8x16xf32>, vector<16x128xf32>, vector<8x128xf32> -> vector<8x128xf32>
    %cst_6 = arith.constant dense<0.000000e+00> : vector<8x64xf32>
    %5 = tpu.matmul %4, %3, %cst_6 {dimension_numbers = #tpu.dot_dimension_numbers<[1], [0], [0], [1], [0, 0, 1, 1], [], []>} : vector<8x128xf32>, vector<128x64xf32>, vector<8x64xf32> -> vector<8x64xf32>
    %c0_7 = arith.constant 0 : index
    %c0_8 = arith.constant 0 : index
    %6 = vector.load %arg4[%c0_7, %c0_8] : memref<8x8xf32, #tpu.memory_space<vmem>>, vector<8x8xf32>
    %c0_9 = arith.constant 0 : index
    %c0_10 = arith.constant 0 : index
    %7 = vector.load %arg5[%c0_9, %c0_10] : memref<8x8xf32, #tpu.memory_space<vmem>>, vector<8x8xf32>
    %c0_11 = arith.constant 0 : index
    %c0_12 = arith.constant 0 : index
    %8 = vector.load %arg6[%c0_11, %c0_12] : memref<64x64xf32, #tpu.memory_space<vmem>>, vector<64x64xf32>
    %c0_13 = arith.constant 0 : index
    %c0_14 = arith.constant 0 : index
    %9 = vector.load %arg7[%c0_13, %c0_14] : memref<64x64xf32, #tpu.memory_space<vmem>>, vector<64x64xf32>
    %c0_15 = arith.constant 0 : index
    %c0_16 = arith.constant 0 : index
    %10 = vector.load %arg8[%c0_15, %c0_16] : memref<64x64xf32, #tpu.memory_space<vmem>>, vector<64x64xf32>
    %c0_17 = arith.constant 0 : index
    %c0_18 = arith.constant 0 : index
    %11 = vector.load %arg9[%c0_17, %c0_18] : memref<1x64xf32, #tpu.memory_space<vmem>>, vector<1x64xf32>
    %cst_19 = arith.constant dense<0.000000e+00> : vector<8x64xf32>
    %12 = tpu.matmul %6, %5, %cst_19 {dimension_numbers = #tpu.dot_dimension_numbers<[1], [0], [0], [1], [0, 0, 1, 1], [], []>} : vector<8x8xf32>, vector<8x64xf32>, vector<8x64xf32> -> vector<8x64xf32>
    %cst_20 = arith.constant dense<0.000000e+00> : vector<8x64xf32>
    %13 = tpu.matmul %7, %5, %cst_20 {dimension_numbers = #tpu.dot_dimension_numbers<[1], [0], [0], [1], [0, 0, 1, 1], [], []>} : vector<8x8xf32>, vector<8x64xf32>, vector<8x64xf32> -> vector<8x64xf32>
    %cst_21 = arith.constant dense<0.000000e+00> : vector<8x64xf32>
    %14 = tpu.matmul %12, %8, %cst_21 {dimension_numbers = #tpu.dot_dimension_numbers<[1], [0], [0], [1], [0, 0, 1, 1], [], []>} : vector<8x64xf32>, vector<64x64xf32>, vector<8x64xf32> -> vector<8x64xf32>
    %cst_22 = arith.constant dense<0.000000e+00> : vector<8x64xf32>
    %15 = tpu.matmul %5, %9, %cst_22 {dimension_numbers = #tpu.dot_dimension_numbers<[1], [0], [0], [1], [0, 0, 1, 1], [], []>} : vector<8x64xf32>, vector<64x64xf32>, vector<8x64xf32> -> vector<8x64xf32>
    %16 = arith.addf %14, %15 : vector<8x64xf32>
    %cst_23 = arith.constant dense<0.000000e+00> : vector<8x64xf32>
    %17 = tpu.matmul %13, %10, %cst_23 {dimension_numbers = #tpu.dot_dimension_numbers<[1], [0], [0], [1], [0, 0, 1, 1], [], []>} : vector<8x64xf32>, vector<64x64xf32>, vector<8x64xf32> -> vector<8x64xf32>
    %18 = arith.addf %16, %17 : vector<8x64xf32>
    %19 = vector.broadcast %11 : vector<1x64xf32> to vector<8x64xf32>
    %20 = arith.addf %18, %19 : vector<8x64xf32>
    %cst_24 = arith.constant 0.000000e+00 : f32
    %21 = vector.broadcast %cst_24 : f32 to vector<8x64xf32>
    %22 = arith.cmpf ogt, %20, %21 : vector<8x64xf32>
    %cst_25 = arith.constant 5.000000e-02 : f32
    %23 = vector.broadcast %cst_25 : f32 to vector<8x64xf32>
    %24 = arith.mulf %23, %20 : vector<8x64xf32>
    %25 = arith.select %22, %20, %24 : vector<8x64xi1>, vector<8x64xf32>
    %c0_26 = arith.constant 0 : index
    %c0_27 = arith.constant 0 : index
    %26 = vector.load %arg10[%c0_26, %c0_27] : memref<16x8xf32, #tpu.memory_space<vmem>>, vector<16x8xf32>
    %c0_28 = arith.constant 0 : index
    %c0_29 = arith.constant 0 : index
    %27 = vector.load %arg11[%c0_28, %c0_29] : memref<64x128xf32, #tpu.memory_space<vmem>>, vector<64x128xf32>
    %cst_30 = arith.constant dense<0.000000e+00> : vector<16x64xf32>
    %28 = tpu.matmul %26, %25, %cst_30 {dimension_numbers = #tpu.dot_dimension_numbers<[1], [0], [0], [1], [0, 0, 1, 1], [], []>} : vector<16x8xf32>, vector<8x64xf32>, vector<16x64xf32> -> vector<16x64xf32>
    %cst_31 = arith.constant dense<0.000000e+00> : vector<16x128xf32>
    %29 = tpu.matmul %28, %27, %cst_31 {dimension_numbers = #tpu.dot_dimension_numbers<[1], [0], [0], [1], [0, 0, 1, 1], [], []>} : vector<16x64xf32>, vector<64x128xf32>, vector<16x128xf32> -> vector<16x128xf32>
    %c0_32 = arith.constant 0 : index
    %c0_33 = arith.constant 0 : index
    %30 = vector.load %arg12[%c0_32, %c0_33] : memref<16x16xf32, #tpu.memory_space<vmem>>, vector<16x16xf32>
    %c0_34 = arith.constant 0 : index
    %c0_35 = arith.constant 0 : index
    %31 = vector.load %arg13[%c0_34, %c0_35] : memref<16x16xf32, #tpu.memory_space<vmem>>, vector<16x16xf32>
    %c0_36 = arith.constant 0 : index
    %c0_37 = arith.constant 0 : index
    %32 = vector.load %arg14[%c0_36, %c0_37] : memref<128x128xf32, #tpu.memory_space<vmem>>, vector<128x128xf32>
    %c0_38 = arith.constant 0 : index
    %c0_39 = arith.constant 0 : index
    %33 = vector.load %arg15[%c0_38, %c0_39] : memref<128x128xf32, #tpu.memory_space<vmem>>, vector<128x128xf32>
    %c0_40 = arith.constant 0 : index
    %c0_41 = arith.constant 0 : index
    %34 = vector.load %arg16[%c0_40, %c0_41] : memref<128x128xf32, #tpu.memory_space<vmem>>, vector<128x128xf32>
    %c0_42 = arith.constant 0 : index
    %c0_43 = arith.constant 0 : index
    %35 = vector.load %arg17[%c0_42, %c0_43] : memref<1x128xf32, #tpu.memory_space<vmem>>, vector<1x128xf32>
    %cst_44 = arith.constant dense<0.000000e+00> : vector<16x128xf32>
    %36 = tpu.matmul %30, %1, %cst_44 {dimension_numbers = #tpu.dot_dimension_numbers<[1], [0], [0], [1], [0, 0, 1, 1], [], []>} : vector<16x16xf32>, vector<16x128xf32>, vector<16x128xf32> -> vector<16x128xf32>
    %cst_45 = arith.constant dense<0.000000e+00> : vector<16x128xf32>
    %37 = tpu.matmul %31, %1, %cst_45 {dimension_numbers = #tpu.dot_dimension_numbers<[1], [0], [0], [1], [0, 0, 1, 1], [], []>} : vector<16x16xf32>, vector<16x128xf32>, vector<16x128xf32> -> vector<16x128xf32>
    %cst_46 = arith.constant dense<0.000000e+00> : vector<16x128xf32>
    %38 = tpu.matmul %36, %32, %cst_46 {dimension_numbers = #tpu.dot_dimension_numbers<[1], [0], [0], [1], [0, 0, 1, 1], [], []>} : vector<16x128xf32>, vector<128x128xf32>, vector<16x128xf32> -> vector<16x128xf32>
    %cst_47 = arith.constant dense<0.000000e+00> : vector<16x128xf32>
    %39 = tpu.matmul %1, %33, %cst_47 {dimension_numbers = #tpu.dot_dimension_numbers<[1], [0], [0], [1], [0, 0, 1, 1], [], []>} : vector<16x128xf32>, vector<128x128xf32>, vector<16x128xf32> -> vector<16x128xf32>
    %40 = arith.addf %38, %39 : vector<16x128xf32>
    %cst_48 = arith.constant dense<0.000000e+00> : vector<16x128xf32>
    %41 = tpu.matmul %37, %34, %cst_48 {dimension_numbers = #tpu.dot_dimension_numbers<[1], [0], [0], [1], [0, 0, 1, 1], [], []>} : vector<16x128xf32>, vector<128x128xf32>, vector<16x128xf32> -> vector<16x128xf32>
    %42 = arith.addf %40, %41 : vector<16x128xf32>
    %43 = vector.broadcast %35 : vector<1x128xf32> to vector<16x128xf32>
    %44 = arith.addf %42, %43 : vector<16x128xf32>
    %cst_49 = arith.constant 0.000000e+00 : f32
    %45 = vector.broadcast %cst_49 : f32 to vector<16x128xf32>
    %46 = arith.cmpf ogt, %44, %45 : vector<16x128xf32>
    %cst_50 = arith.constant 5.000000e-02 : f32
    %47 = vector.broadcast %cst_50 : f32 to vector<16x128xf32>
    %48 = arith.mulf %47, %44 : vector<16x128xf32>
    %49 = arith.select %46, %44, %48 : vector<16x128xi1>, vector<16x128xf32>
    %50 = arith.addf %29, %49 : vector<16x128xf32>
    %cst_51 = arith.constant 5.000000e-01 : f32
    %51 = vector.broadcast %cst_51 : f32 to vector<16x128xf32>
    %52 = arith.mulf %50, %51 : vector<16x128xf32>
    %c0_52 = arith.constant 0 : index
    %c0_53 = arith.constant 0 : index
    %c0_54 = arith.constant 0 : index
    %53 = vector.load %arg18[%c0_52, %c0_53, %c0_54] : memref<1x16x128xf32, #tpu.memory_space<vmem>>, vector<1x16x128xf32>
    %54 = vector.shape_cast %53 : vector<1x16x128xf32> to vector<16x128xf32>
    %55 = vector.shape_cast %52 : vector<16x128xf32> to vector<1x16x128xf32>
    tpu.vector_store %arg18[%c0_52, %c0_53, %c0_54], %55 {strides = array<i32>} : memref<1x16x128xf32, #tpu.memory_space<vmem>>, vector<1x16x128xf32>,
    return
  }
  func.func @transform_0(%arg0: i32) -> (i32, i32, i32) {
    %c0_i32 = arith.constant 0 : i32
    %c0_i32_0 = arith.constant 0 : i32
    %c0_i32_1 = arith.constant 0 : i32
    return %arg0, %c0_i32, %c0_i32_0 : i32, i32, i32
  }
  func.func @transform_1(%arg0: i32) -> (i32, i32) {
    %c0_i32 = arith.constant 0 : i32
    %c0_i32_0 = arith.constant 0 : i32
    %c0_i32_1 = arith.constant 0 : i32
    return %c0_i32, %c0_i32_0 : i32, i32
  }
  func.func @transform_2(%arg0: i32) -> (i32, i32) {
    %c0_i32 = arith.constant 0 : i32
    %c0_i32_0 = arith.constant 0 : i32
    %c0_i32_1 = arith.constant 0 : i32
    return %c0_i32, %c0_i32_0 : i32, i32
  }
  func.func @transform_3(%arg0: i32) -> (i32, i32) {
    %c0_i32 = arith.constant 0 : i32
    %c0_i32_0 = arith.constant 0 : i32
    %c0_i32_1 = arith.constant 0 : i32
    return %c0_i32, %c0_i32_0 : i32, i32
  }
  func.func @transform_4(%arg0: i32) -> (i32, i32) {
    %c0_i32 = arith.constant 0 : i32
    %c0_i32_0 = arith.constant 0 : i32
    %c0_i32_1 = arith.constant 0 : i32
    return %c0_i32, %c0_i32_0 : i32, i32
  }
  func.func @transform_5(%arg0: i32) -> (i32, i32) {
    %c0_i32 = arith.constant 0 : i32
    %c0_i32_0 = arith.constant 0 : i32
    %c0_i32_1 = arith.constant 0 : i32
    return %c0_i32, %c0_i32_0 : i32, i32
  }
  func.func @transform_6(%arg0: i32) -> (i32, i32) {
    %c0_i32 = arith.constant 0 : i32
    %c0_i32_0 = arith.constant 0 : i32
    %c0_i32_1 = arith.constant 0 : i32
    return %c0_i32, %c0_i32_0 : i32, i32
  }
  func.func @transform_7(%arg0: i32) -> (i32, i32) {
    %c0_i32 = arith.constant 0 : i32
    %c0_i32_0 = arith.constant 0 : i32
    %c0_i32_1 = arith.constant 0 : i32
    return %c0_i32, %c0_i32_0 : i32, i32
  }
  func.func @transform_8(%arg0: i32) -> (i32, i32) {
    %c0_i32 = arith.constant 0 : i32
    %c0_i32_0 = arith.constant 0 : i32
    %c0_i32_1 = arith.constant 0 : i32
    return %c0_i32, %c0_i32_0 : i32, i32
  }
  func.func @transform_9(%arg0: i32) -> (i32, i32) {
    %c0_i32 = arith.constant 0 : i32
    %c0_i32_0 = arith.constant 0 : i32
    %c0_i32_1 = arith.constant 0 : i32
    return %c0_i32, %c0_i32_0 : i32, i32
  }
  func.func @transform_10(%arg0: i32) -> (i32, i32) {
    %c0_i32 = arith.constant 0 : i32
    %c0_i32_0 = arith.constant 0 : i32
    %c0_i32_1 = arith.constant 0 : i32
    return %c0_i32, %c0_i32_0 : i32, i32
  }
  func.func @transform_11(%arg0: i32) -> (i32, i32) {
    %c0_i32 = arith.constant 0 : i32
    %c0_i32_0 = arith.constant 0 : i32
    %c0_i32_1 = arith.constant 0 : i32
    return %c0_i32, %c0_i32_0 : i32, i32
  }
  func.func @transform_12(%arg0: i32) -> (i32, i32) {
    %c0_i32 = arith.constant 0 : i32
    %c0_i32_0 = arith.constant 0 : i32
    %c0_i32_1 = arith.constant 0 : i32
    return %c0_i32, %c0_i32_0 : i32, i32
  }
  func.func @transform_13(%arg0: i32) -> (i32, i32) {
    %c0_i32 = arith.constant 0 : i32
    %c0_i32_0 = arith.constant 0 : i32
    %c0_i32_1 = arith.constant 0 : i32
    return %c0_i32, %c0_i32_0 : i32, i32
  }
  func.func @transform_14(%arg0: i32) -> (i32, i32) {
    %c0_i32 = arith.constant 0 : i32
    %c0_i32_0 = arith.constant 0 : i32
    %c0_i32_1 = arith.constant 0 : i32
    return %c0_i32, %c0_i32_0 : i32, i32
  }
  func.func @transform_15(%arg0: i32) -> (i32, i32) {
    %c0_i32 = arith.constant 0 : i32
    %c0_i32_0 = arith.constant 0 : i32
    %c0_i32_1 = arith.constant 0 : i32
    return %c0_i32, %c0_i32_0 : i32, i32
  }
  func.func @transform_16(%arg0: i32) -> (i32, i32) {
    %c0_i32 = arith.constant 0 : i32
    %c0_i32_0 = arith.constant 0 : i32
    %c0_i32_1 = arith.constant 0 : i32
    return %c0_i32, %c0_i32_0 : i32, i32
  }
  func.func @transform_17(%arg0: i32) -> (i32, i32, i32) {
    %c0_i32 = arith.constant 0 : i32
    %c0_i32_0 = arith.constant 0 : i32
    %c0_i32_1 = arith.constant 0 : i32
    return %arg0, %c0_i32, %c0_i32_0 : i32, i32, i32
  }
}

</mosaic_0001>

<bundles_post_ra>
// kernel: tile.28
= control target key start
LH: loop header
LB: loop body
LE: loop exit
PB: predicated region body
PF: predicated region fallthrough
CT: control target
= control target key end

     0   :  { %s28_s0 = inlined_call_operand.vmem [shape: f32[8], index: 0, kind: input, shape index: {}]   ;;  %s29_s1 = inlined_call_operand.vmem [shape: f32[16,8], index: 1, kind: output, shape index: {}]  }
   0x1   :  { %v4_v0 = vld [vmem:[%s28_s0] ss:$0 sm:$0xff] }
   0x2   :  { %5 = vst [vmem:[%s29_s1] sm:$0xff] %v4_v0  ;;  %8 = vst [vmem:[%s29_s1 + $0x8] sm:$0xff] %v4_v0 }

// kernel: tile.29
= control target key start
LH: loop header
LB: loop body
LE: loop exit
PB: predicated region body
PF: predicated region fallthrough
CT: control target
= control target key end

     0   :  { %s131_s10 = smov 120   ;;  %s132_s11 = smov 104   ;;  %vm3_vm0 = vcmask 64512   ;;  %vm9_vm1 = vcmask 1048512   ;;  %vm15_vm2 = vcmask 982912   ;;  %vm21_vm3 = vcmask 917312   ;;  %s207_s0 = inlined_call_operand.vmem [shape: f32[16,8], index: 0, kind: input, shape index: {}]   ;;  %s208_s1 = inlined_call_operand.vmem [shape: f32[1,128], index: 1, kind: output, shape index: {}]  }
   0x1   :  { %v101_v0 = vld [vmem:[%s207_s0 + $0xf] sm:$0x1]   ;;  %v103_v1 = vld [vmem:[%s207_s0 + $0xd] sm:$0x1]   ;;  %v102_v2 = vld [vmem:[%s207_s0 + $0xe] sm:$0x1]  }
   0x2   :  { %7 = vrot.lane.b32.xlu0 %v101_v0, %s131_s10  ;;  %19 = vrot.lane.b32.xlu1 %v103_v1, %s132_s11  ;;  %v104_v3 = vld [vmem:[%s207_s0 + $0xc] sm:$0x1]   ;;  %s133_s16 = smov 112   ;;  %s134_s17 = smov 96   ;;  %v105_v4 = vld [vmem:[%s207_s0 + $0xb] sm:$0x1]  }
   0x3   :  { %v106_v5 = vld [vmem:[%s207_s0 + $0xa] sm:$0x1]   ;;  %v2_v6 = vld [vmem:[%s207_s0] sm:$0x1]   ;;  %s135_s24 = smov 88   ;;  %s136_s25 = smov 80  }
   0x4   :  { %4 = vst.msk [vmem:[#allocation0] sm:$0x1] %vm3_vm0, %v2_v6   ;;  %v107_v7 = vld [vmem:[%s207_s0 + $0x9] sm:$0x1]   ;;  %v108_v8 = vld [vmem:[%s207_s0 + $0x8] sm:$0x1]  }
   0x5   :  { %s137_s30 = smov 72   ;;  %s138_s2 = smov 64   ;;  %v109_v9 = vld [vmem:[%s207_s0 + $0x7] sm:$0x1]   ;;  %v110_v10 = vld [vmem:[%s207_s0 + $0x6] sm:$0x1]  }
   0x6   :  { %13 = vrot.lane.b32.xlu0 %v102_v2, %s133_s16  ;;  %25 = vrot.lane.b32.xlu1 %v104_v3, %s134_s17  ;;  %s139_s7 = smov 56   ;;  %s140_s8 = smov 48   ;;  %v111_v11 = vld [vmem:[%s207_s0 + $0x5] sm:$0x1]   ;;  %v112_v12 = vld [vmem:[%s207_s0 + $0x4] sm:$0x1]  }
   0x7   :  { %s141_s13 = smov 40   ;;  %s142_s14 = smov 32   ;;  %v113_v13 = vld [vmem:[%s207_s0 + $0x3] sm:$0x1]   ;;  %v114_v14 = vld [vmem:[%s207_s0 + $0x2] sm:$0x1]  }
   0x8   :  { %s143_s19 = smov 24   ;;  %s144_s20 = smov 16   ;;  %v115_v15 = vld [vmem:[%s207_s0 + $0x1] sm:$0x1]   ;;  %vm27_vm4 = vcmask 851712   ;;  %vm33_vm5 = vcmask 786112  }
   0x9   :  { %s145_s0 = smov 8   ;;  %vm39_vm6 = vcmask 720512   ;;  %vm45_vm7 = vcmask 654912   ;;  %vm51_vm8 = vcmask 589312   ;;  %vm57_vm9 = vcmask 523712  }
   0xa   :  { %31 = vrot.lane.b32.xlu0 %v105_v4, %s135_s24  ;;  %37 = vrot.lane.b32.xlu1 %v106_v5, %s136_s25  ;;  %vm63_vm10 = vcmask 458112   ;;  %vm69_vm11 = vcmask 392512   ;;  %vm75_vm12 = vcmask 326912   ;;  %vm81_vm13 = vcmask 261312  }
   0xb   :  { %vm87_vm14 = vcmask 195712   ;;  %vm93_vm15 = vcmask 130112  }
   0xe   :  { %43 = vrot.lane.b32.xlu0 %v107_v7, %s137_s30  ;;  %49 = vrot.lane.b32.xlu1 %v108_v8, %s138_s2 }
  0x12   :  { %55 = vrot.lane.b32.xlu0 %v109_v9, %s139_s7  ;;  %61 = vrot.lane.b32.xlu1 %v110_v10, %s140_s8 }
  0x16   :  { %67 = vrot.lane.b32.xlu0 %v111_v11, %s141_s13  ;;  %73 = vrot.lane.b32.xlu1 %v112_v12, %s142_s14 }
  0x1a   :  { %79 = vrot.lane.b32.xlu0 %v113_v13, %s143_s19  ;;  %85 = vrot.lane.b32.xlu1 %v114_v14, %s144_s20 }
  0x1e   :  { %91 = vrot.lane.b32.xlu0 %v115_v15, %s145_s0 }
  0x74   :  { %v8_v16 = vpop.permute.xlu0 %7   ;;  %v20_v17 = vpop.permute.xlu1 %19  }
  0x75   :  { %10 = vst.msk [vmem:[#allocation0] sm:$0x1] %vm9_vm1, %v8_v16  }
  0x78   :  { %v14_v18 = vpop.permute.xlu0 %13   ;;  %v26_v19 = vpop.permute.xlu1 %25  }
  0x79   :  { %16 = vst.msk [vmem:[#allocation0] sm:$0x1] %vm15_vm2, %v14_v18  }
  0x7a   :  { %22 = vst.msk [vmem:[#allocation0] sm:$0x1] %vm21_vm3, %v20_v17  }
  0x7b   :  { %28 = vst.msk [vmem:[#allocation0] sm:$0x1] %vm27_vm4, %v26_v19  }
  0x7c   :  { %v32_v20 = vpop.permute.xlu0 %31   ;;  %v38_v21 = vpop.permute.xlu1 %37  }
  0x7d   :  { %34 = vst.msk [vmem:[#allocation0] sm:$0x1] %vm33_vm5, %v32_v20  }
  0x7e   :  { %40 = vst.msk [vmem:[#allocation0] sm:$0x1] %vm39_vm6, %v38_v21  }
  0x80   :  { %v44_v22 = vpop.permute.xlu0 %43   ;;  %v50_v23 = vpop.permute.xlu1 %49  }
  0x81   :  { %46 = vst.msk [vmem:[#allocation0] sm:$0x1] %vm45_vm7, %v44_v22  }
  0x82   :  { %52 = vst.msk [vmem:[#allocation0] sm:$0x1] %vm51_vm8, %v50_v23  }
  0x84   :  { %v56_v24 = vpop.permute.xlu0 %55   ;;  %v62_v25 = vpop.permute.xlu1 %61  }
  0x85   :  { %58 = vst.msk [vmem:[#allocation0] sm:$0x1] %vm57_vm9, %v56_v24  }
  0x86   :  { %64 = vst.msk [vmem:[#allocation0] sm:$0x1] %vm63_vm10, %v62_v25  }
  0x88   :  { %v68_v26 = vpop.permute.xlu0 %67   ;;  %v74_v27 = vpop.permute.xlu1 %73  }
  0x89   :  { %70 = vst.msk [vmem:[#allocation0] sm:$0x1] %vm69_vm11, %v68_v26  }
  0x8a   :  { %76 = vst.msk [vmem:[#allocation0] sm:$0x1] %vm75_vm12, %v74_v27  }
  0x8c   :  { %v80_v28 = vpop.permute.xlu0 %79   ;;  %v86_v29 = vpop.permute.xlu1 %85  }
  0x8d   :  { %82 = vst.msk [vmem:[#allocation0] sm:$0x1] %vm81_vm13, %v80_v28  }
  0x8e   :  { %88 = vst.msk [vmem:[#allocation0] sm:$0x1] %vm87_vm14, %v86_v29  }
  0x90   :  { %v92_v30 = vpop.permute.xlu0 %91  }
  0x91   :  { %94 = vst.msk [vmem:[#allocation0] sm:$0x1] %vm93_vm15, %v92_v30  }
  0x98   :  { %v98_v31 = vld [vmem:[#allocation0] sm:$0x1] }
  0x99   :  { %100 = vst [vmem:[%s208_s1] sm:$0x1] %v98_v31 }

// kernel: tile.23
= control target key start
LH: loop header
LB: loop body
LE: loop exit
PB: predicated region body
PF: predicated region fallthrough
CT: control target
= control target key end

     0   :  { %s22_s0 = inlined_call_operand.vmem [shape: f32[8], index: 0, kind: input, shape index: {}]   ;;  %s23_s1 = inlined_call_operand.vmem [shape: f32[8,8], index: 1, kind: output, shape index: {}]  }
   0x1   :  { %v4_v0 = vld [vmem:[%s22_s0] ss:$0 sm:$0xff] }
   0x2   :  { %5 = vst [vmem:[%s23_s1] sm:$0xff] %v4_v0 }

// kernel: tile.24
= control target key start
LH: loop header
LB: loop body
LE: loop exit
PB: predicated region body
PF: predicated region fallthrough
CT: control target
= control target key end

     0   :  { %s67_s10 = smov 56   ;;  %s68_s11 = smov 40   ;;  %vm3_vm0 = vcmask 64512   ;;  %vm9_vm1 = vcmask 523712   ;;  %vm15_vm2 = vcmask 458112   ;;  %vm21_vm3 = vcmask 392512   ;;  %s111_s0 = inlined_call_operand.vmem [shape: f32[8,8], index: 0, kind: input, shape index: {}]   ;;  %s112_s1 = inlined_call_operand.vmem [shape: f32[1,64], index: 1, kind: output, shape index: {}]  }
   0x1   :  { %v53_v0 = vld [vmem:[%s111_s0 + $0x7] sm:$0x1]   ;;  %v55_v1 = vld [vmem:[%s111_s0 + $0x5] sm:$0x1]   ;;  %v54_v2 = vld [vmem:[%s111_s0 + $0x6] sm:$0x1]  }
   0x2   :  { %7 = vrot.lane.b32.xlu0 %v53_v0, %s67_s10  ;;  %19 = vrot.lane.b32.xlu1 %v55_v1, %s68_s11  ;;  %v56_v3 = vld [vmem:[%s111_s0 + $0x4] sm:$0x1]   ;;  %v2_v4 = vld [vmem:[%s111_s0] sm:$0x1]   ;;  %s69_s18 = smov 48   ;;  %s70_s19 = smov 32  }
   0x3   :  { %4 = vst.msk [vmem:[#allocation0] sm:$0x1] %vm3_vm0, %v2_v4   ;;  %v57_v5 = vld [vmem:[%s111_s0 + $0x3] sm:$0x1]   ;;  %v58_v6 = vld [vmem:[%s111_s0 + $0x2] sm:$0x1]  }
   0x4   :  { %s71_s24 = smov 24   ;;  %s72_s25 = smov 16   ;;  %v59_v7 = vld [vmem:[%s111_s0 + $0x1] sm:$0x1]   ;;  %vm27_vm4 = vcmask 326912   ;;  %vm33_vm5 = vcmask 261312  }
   0x5   :  { %s73_s0 = smov 8   ;;  %vm39_vm6 = vcmask 195712   ;;  %vm45_vm7 = vcmask 130112  }
   0x6   :  { %13 = vrot.lane.b32.xlu0 %v54_v2, %s69_s18  ;;  %25 = vrot.lane.b32.xlu1 %v56_v3, %s70_s19 }
   0xa   :  { %31 = vrot.lane.b32.xlu0 %v57_v5, %s71_s24  ;;  %37 = vrot.lane.b32.xlu1 %v58_v6, %s72_s25 }
   0xe   :  { %43 = vrot.lane.b32.xlu0 %v59_v7, %s73_s0 }
  0x74   :  { %v8_v8 = vpop.permute.xlu0 %7   ;;  %v20_v9 = vpop.permute.xlu1 %19  }
  0x75   :  { %10 = vst.msk [vmem:[#allocation0] sm:$0x1] %vm9_vm1, %v8_v8  }
  0x78   :  { %v14_v10 = vpop.permute.xlu0 %13   ;;  %v26_v11 = vpop.permute.xlu1 %25  }
  0x79   :  { %16 = vst.msk [vmem:[#allocation0] sm:$0x1] %vm15_vm2, %v14_v10  }
  0x7a   :  { %22 = vst.msk [vmem:[#allocation0] sm:$0x1] %vm21_vm3, %v20_v9  }
  0x7b   :  { %28 = vst.msk [vmem:[#allocation0] sm:$0x1] %vm27_vm4, %v26_v11  }
  0x7c   :  { %v32_v12 = vpop.permute.xlu0 %31   ;;  %v38_v13 = vpop.permute.xlu1 %37  }
  0x7d   :  { %34 = vst.msk [vmem:[#allocation0] sm:$0x1] %vm33_vm5, %v32_v12  }
  0x7e   :  { %40 = vst.msk [vmem:[#allocation0] sm:$0x1] %vm39_vm6, %v38_v13  }
  0x80   :  { %v44_v14 = vpop.permute.xlu0 %43  }
  0x81   :  { %46 = vst.msk [vmem:[#allocation0] sm:$0x1] %vm45_vm7, %v44_v14  }
  0x88   :  { %v50_v15 = vld [vmem:[#allocation0] sm:$0x1] }
  0x89   :  { %52 = vst [vmem:[%s112_s1] sm:$0x1] %v50_v15 }

// kernel: multi_layer_forward.2
= control target key start
LH: loop header
LB: loop body
LE: loop exit
PB: predicated region body
PF: predicated region fallthrough
CT: control target
= control target key end

     0   :  { %s2285_s24 = smov 0   ;;  %s2565_s0 = inlined_call_operand.vmem [shape: f32[2,16,64], index: 0, kind: input, shape index: {}]   ;;  %s2566_s1 = inlined_call_operand.vmem [shape: f32[8,16], index: 1, kind: input, shape index: {}]   ;;  %s2567_s2 = inlined_call_operand.vmem [shape: f32[64,32], index: 2, kind: input, shape index: {}]   ;;  %s2568_s3 = inlined_call_operand.vmem [shape: f32[8,8], index: 3, kind: input, shape index: {}]   ;;  %s2569_s4 = inlined_call_operand.vmem [shape: f32[8,8], index: 4, kind: input, shape index: {}]   ;;  %s2570_s5 = inlined_call_operand.vmem [shape: f32[32,64], index: 5, kind: input, shape index: {}]   ;;  %s2571_s6 = inlined_call_operand.vmem [shape: f32[32,64], index: 6, kind: input, shape index: {}]   ;;  %s2572_s7 = inlined_call_operand.vmem [shape: f32[32,64], index: 7, kind: input, shape index: {}]   ;;  %s2573_s8 = inlined_call_operand.vmem [shape: f32[1,64], index: 8, kind: input, shape index: {}]   ;;  %s2574_s9 = inlined_call_operand.vmem [shape: f32[16,8], index: 9, kind: input, shape index: {}]   ;;  %s2575_s10 = inlined_call_operand.vmem [shape: f32[64,128], index: 10, kind: input, shape index: {}]   ;;  %s2576_s11 = inlined_call_operand.vmem [shape: f32[16,16], index: 11, kind: input, shape index: {}]   ;;  %s2577_s12 = inlined_call_operand.vmem [shape: f32[16,16], index: 12, kind: input, shape index: {}]   ;;  %s2578_s13 = inlined_call_operand.vmem [shape: f32[64,128], index: 13, kind: input, shape index: {}]   ;;  %s2579_s14 = inlined_call_operand.vmem [shape: f32[64,128], index: 14, kind: input, shape index: {}]   ;;  %s2580_s15 = inlined_call_operand.vmem [shape: f32[64,128], index: 15, kind: input, shape index: {}]   ;;  %s2581_s16 = inlined_call_operand.vmem [shape: f32[1,128], index: 16, kind: input, shape index: {}]   ;;  %s2582_s17 = inlined_call_operand.vmem [shape: f32[2,16,128], index: 17, kind: output, shape index: {}]  }
   0x1   :  { %2583 = sst [smem:[#allocation2_spill]] %s2565_s0 }
   0x2   :  { %2584 = sst [smem:[#allocation3_spill]] %s2566_s1 }
   0x3 LB: > { %s1782_s25 = sadd.s32 4294967295, %s2190_s24   ;;  %p1786_p0 = scmp.ge.s32.totalorder %s2190_s24, 1  ;;  %s2190_s24 = sphi %s2285_s24, %s27_s24  }
   0x4   : > { %p487_p1 = scmp.lt.s32.totalorder %s2190_s24, 3 }
   0x6   : > { %p488_p2 = pnand %p1786_p0, %p487_p1 }
   0x7   : > { %p539_p3 = scmp.lt.s32.totalorder (!%p488_p2), %s1782_s25, 1  ;;  %v2192_v0 = vmov (!%p488_p2), 0.0|0.0   ;;  %vm2193_vm0 = vmmov (!%p488_p2), 0   ;;  %v2194_v1 = vmov (!%p488_p2), 0.0   ;;  %v552_v2 = vld [vmem:[%s2567_s2] sm:$0xff] (!%p488_p2)  ;;  %v553_v3 = vld [vmem:[%s2567_s2 + $0x8] sm:$0xff] (!%p488_p2) }
   0x8   : > { %491 = sbr.rel (%p488_p2) target bundleno = 1329 (0x531), region = 88  ;;  %2064 = vmatprep.subr.bf16.mxu0 (!%p488_p2), %v2192_v0  ;;  %1904 = vmatprep.mubr.msk.f32.mxu0 (!%p488_p2), %vm2193_vm0, %v2194_v1  ;;  %v554_v4 = vld [vmem:[%s2567_s2 + $0x10] sm:$0xff] (!%p488_p2)  ;;  %v2068_v5 = vpack.c.bf16 (!%p488_p2), %v553_v3, %v552_v2  ;;  %v555_v6 = vld [vmem:[%s2567_s2 + $0x18] sm:$0xff] (!%p488_p2)  ;;  %s2585_s22 = sld [smem:[#allocation2_spill]] (!%p488_p2)  ;;  %v556_v8 = vld [vmem:[%s2567_s2 + $0x20] sm:$0xff] (!%p488_p2)  ;;  %vm560_vm1 = vcmask (!%p488_p2), 130048  }
   0x9   : > { %2067 = vmatprep.subr.bf16.mxu1 (!%p488_p2), %v2192_v0  ;;  %1923 = vmatprep.mubr.msk.f32.mxu1 (!%p488_p2), %vm2193_vm0, %v2194_v1  ;;  %v2071_v7 = vpack.c.bf16 (!%p488_p2), %v555_v6, %v554_v4  ;;  %v557_v9 = vld [vmem:[%s2567_s2 + $0x28] sm:$0xff] (!%p488_p2)  ;;  %s2586_s18 = sld [smem:[#allocation3_spill]] (!%p488_p2)  ;;  %v558_v15 = vld [vmem:[%s2567_s2 + $0x30] sm:$0xff] (!%p488_p2)  ;;  %v559_v16 = vld [vmem:[%s2567_s2 + $0x38] sm:$0xff] (!%p488_p2)  ;;  %vm634_vm2 = vcmask (!%p488_p2), 523264   ;;  %vm723_vm3 = vcmask (!%p488_p2), 64512  }
   0xa   : > { %2069 = vmatpush3.bf16.msra.mxu1 (!%p488_p2), %v2068_v5  ;;  %v2074_v13 = vpack.c.bf16 (!%p488_p2), %v557_v9, %v556_v8  ;;  %v2077_v17 = vpack.c.bf16 (!%p488_p2), %v559_v16, %v558_v15  ;;  %v710_v20 = vld [vmem:[%s2570_s5] sm:$0xff] (!%p488_p2)  ;;  %v711_v21 = vld [vmem:[%s2570_s5 + $0x8] sm:$0xff] (!%p488_p2)  ;;  %v712_v22 = vld [vmem:[%s2570_s5 + $0x10] sm:$0xff] (!%p488_p2)  ;;  %vm870_vm4 = vcmask (!%p488_p2), 261120  }
   0xb   : > { %2070 = vmatprep.subr.bf16.mxu1 (!%p488_p2), %v2192_v0  ;;  %v2086_v23 = vpack.c.bf16 (!%p488_p2), %v711_v21, %v710_v20  ;;  %v713_v24 = vld [vmem:[%s2570_s5 + $0x18] sm:$0xff] (!%p488_p2)  ;;  %v708_v26 = vld [vmem:[%s2568_s3] sm:$0xff] (!%p488_p2)  ;;  %v715_v29 = vld [vmem:[%s2571_s6 + $0x8] sm:$0xff] (!%p488_p2) }
   0xc   : > { %v2089_v25 = vpack.c.bf16 (!%p488_p2), %v713_v24, %v712_v22  ;;  %v714_v28 = vld [vmem:[%s2571_s6] sm:$0xff] (!%p488_p2)  ;;  %v716_v33 = vld [vmem:[%s2571_s6 + $0x10] sm:$0xff] (!%p488_p2)  ;;  %v717_v34 = vld [vmem:[%s2571_s6 + $0x18] sm:$0xff] (!%p488_p2) }
   0xd   : > { %v709_v31 = vld [vmem:[%s2569_s4] sm:$0xff] (!%p488_p2)  ;;  %v2080_v32 = vpack.c.bf16 (!%p488_p2), %v715_v29, %v714_v28  ;;  %v2083_v35 = vpack.c.bf16 (!%p488_p2), %v717_v34, %v716_v33  ;;  %v719_v37 = vld [vmem:[%s2572_s7 + $0x8] sm:$0xff] (!%p488_p2)  ;;  %v720_v39 = vld [vmem:[%s2572_s7 + $0x10] sm:$0xff] (!%p488_p2) }
   0xe   : > { %2072 = vmatpush3.bf16.msra.mxu1 (!%p488_p2), %v2071_v7  ;;  %v718_v36 = vld [vmem:[%s2572_s7] sm:$0xff] (!%p488_p2)  ;;  %v721_v40 = vld [vmem:[%s2572_s7 + $0x18] sm:$0xff] (!%p488_p2)  ;;  %v1193_v49 = vld [vmem:[%s2576_s11 + $0x8] sm:$0xff] (!%p488_p2) }
   0xf   : > { %s2588_s25 = smov (!%p539_p3, %s1782_s25), 1  ;;  %v551_v14 = vld [vmem:[%s2586_s18] sm:$0xff]  ;;  %2073 = vmatprep.subr.bf16.mxu1 %v2192_v0  ;;  %v2092_v38 = vpack.c.bf16 %v719_v37, %v718_v36  ;;  %v2095_v41 = vpack.c.bf16 %v721_v40, %v720_v39  ;;  %v1197_v52 = vld [vmem:[%s2578_s13 + $0x8] sm:$0xff]  ;;  %v1198_v54 = vld [vmem:[%s2578_s13 + $0x10] sm:$0xff] }
  0x10   : > { %s1816_s1 = sshll.u32 %s2588_s25, 4  ;;  %v1192_v48 = vld [vmem:[%s2576_s11] sm:$0xff]  ;;  %v1199_v55 = vld [vmem:[%s2578_s13 + $0x18] sm:$0xff]  ;;  %v1201_v58 = vld [vmem:[%s2578_s13 + $0x28] sm:$0xff] }
  0x11   : > { %s543_s23 = scalar_lea.vmem %s2585_s22, %s1816_s1  ;;  %v1101_v50 = vld [vmem:[%s2574_s9] sm:$0xff]  ;;  %v2125_v56 = vpack.c.bf16 %v1199_v55, %v1198_v54  ;;  %v1202_v60 = vld [vmem:[%s2578_s13 + $0x30] sm:$0xff]  ;;  %v1203_v61 = vld [vmem:[%s2578_s13 + $0x38] sm:$0xff]  ;;  %s548_s27 = scalar_lea.vmem %s2582_s17, %s1816_s1 }
  0x12   : > { %v2326_v10 = vld [vmem:[%s543_s23] sm:$0xff]  ;;  %v2328_v11 = vld [vmem:[%s543_s23 + $0x8] sm:$0xff]  ;;  %2075 = vmatpush3.bf16.msra.mxu1 %v2074_v13  ;;  %v2133_v62 = vpack.c.bf16 %v1203_v61, %v1202_v60  ;;  %v1206_v20 = vld [vmem:[%s2579_s14 + $0x10] sm:$0xff] }
  0x13   : > { %v2332_v12 = vpack.c.bf16 %v2328_v11, %v2326_v10  ;;  %2076 = vmatprep.subr.bf16.mxu1 %v2192_v0  ;;  %v1196_v51 = vld [vmem:[%s2578_s13] sm:$0xff]  ;;  %v1205_v15 = vld [vmem:[%s2579_s14 + $0x8] sm:$0xff]  ;;  %v1207_v21 = vld [vmem:[%s2579_s14 + $0x18] sm:$0xff] }
  0x14   : > { %v2121_v53 = vpack.c.bf16 %v1197_v52, %v1196_v51  ;;  %v1200_v57 = vld [vmem:[%s2578_s13 + $0x20] sm:$0xff]  ;;  %v1195_v22 = vld [vmem:[%s2577_s12 + $0x8] sm:$0xff]  ;;  %v1109_v37 = vld [vmem:[%s2575_s10 + $0x30] sm:$0xff] }
  0x15   : > { %2066 = vmatpush3.bf16.msra.mxu0 %v2332_v12  ;;  %v2129_v59 = vpack.c.bf16 %v1201_v58, %v1200_v57  ;;  %v1212_v63 = vld [vmem:[%s2580_s15] sm:$0xff]  ;;  %v1215_v40 = vld [vmem:[%s2580_s15 + $0x18] sm:$0xff] }
  0x16   : > { %1926 = vmatprep.subr.mxu0 %v2194_v1  ;;  %2078 = vmatpush3.bf16.msra.mxu1 %v2077_v17  ;;  %v1798_v5 = vld [vmem:[%s2573_s8] ss:$0 sm:$0xff]  ;;  %v1102_v17 = vld [vmem:[%s2574_s9 + $0x8] sm:$0xff] }
  0x17   : > { %2085 = vmatprep.subr.bf16.mxu1 %v2192_v0  ;;  %v1208_v24 = vld [vmem:[%s2579_s14 + $0x20] sm:$0xff] }
  0x18   : > { %1905 = vmatmul.mubr.msk.f32.vlgmr.msra.gmra.mrb[0].mxu0 %vm560_vm1, %v551_v14  ;;  %v1204_v14 = vld [vmem:[%s2579_s14] sm:$0xff] }
  0x19   : > { %1928 = vmatprep.mubr.msk.f32.mxu0 %vm2193_vm0, %v2194_v1  ;;  %v1103_v29 = vld [vmem:[%s2575_s10] sm:$0xff] }
  0x1a   : > { %v1107_v34 = vld [vmem:[%s2575_s10 + $0x20] sm:$0xff] }
  0x1b   : > { %v1811_v58 = vld [vmem:[%s2581_s16] ss:$0 sm:$0xff] }
  0xeb   : > { %v630_v18 = vpop.f32.mrb[0].mxu0 }
  0xec   : > { %v1906_v19 = vpop.f32.mrb[1].mxu0  ;;  %1924 = vmatmul.mubr.msk.f32.vlgmr.msra.gmra.mrb[0].mxu1 %vm634_vm2, %v630_v18  ;;  %v1194_v18 = vld [vmem:[%s2577_s12] sm:$0xff] }
  0xed   : > { %1955 = vmatprep.mubr.msk.f32.mxu1 %vm2193_vm0, %v2194_v1  ;;  %2087 = vmatpush3.bf16.msra.mxu1 %v2086_v23  ;;  %v2105_v19 = vpack.c.bf16 %v1205_v15, %v1204_v14  ;;  %v2109_v23 = vpack.c.bf16 %v1207_v21, %v1206_v20 }
  0xee   : > { %2088 = vmatprep.subr.bf16.mxu1 %v2192_v0 }
  0xf1   : > { %2090 = vmatpush3.bf16.msra.mxu1 %v2089_v25  ;;  %v1209_v25 = vld [vmem:[%s2579_s14 + $0x28] sm:$0xff] }
 0x1bf   : > { %v704_v27 = vpop.f32.mrb[0].mxu1 }
 0x1c0   : > { %v1925_v30 = vpop.f32.mrb[1].mxu1  ;;  %1927 = vmatpush3.msra.mxu0 %v704_v27 }
 0x1c1   : > { %1929 = vmatmul.mubr.msk.f32.vlgmr.msra.gmra.mrb[2].mxu0 %vm723_vm3, %v708_v26  ;;  %1931 = vmatprep.subr.mxu0 %v2194_v1  ;;  %v1210_v26 = vld [vmem:[%s2579_s14 + $0x30] sm:$0xff] }
 0x1c2   : > { %1932 = vmatpush3.msra.mxu0 %v704_v27  ;;  %1933 = vmatprep.mubr.msk.f32.mxu0 %vm2193_vm0, %v2194_v1 }
 0x1c3   : > { %2079 = vmatprep.subr.bf16.mxu0 %v2192_v0 }
 0x1c5   : > { %1934 = vmatmul.mubr.msk.f32.vlgmr.msra.gmra.mrb[4].mxu0 %vm723_vm3, %v709_v31  ;;  %v1105_v31 = vld [vmem:[%s2575_s10 + $0x10] sm:$0xff] }
 0x1c6   : > { %2081 = vmatpush3.bf16.msra.mxu0 %v2080_v32  ;;  %1944 = vmatprep.mubr.msk.f32.mxu0 %vm2193_vm0, %v2194_v1  ;;  %v1106_v32 = vld [vmem:[%s2575_s10 + $0x18] sm:$0xff] }
 0x1c7   : > { %2082 = vmatprep.subr.bf16.mxu0 %v2192_v0  ;;  %v2157_v33 = vpack.c.bf16 %v1106_v32, %v1105_v31 }
 0x1ca   : > { %2084 = vmatpush3.bf16.msra.mxu0 %v2083_v35  ;;  %v1108_v35 = vld [vmem:[%s2575_s10 + $0x28] sm:$0xff] }
 0x1cb   : > { %2091 = vmatprep.subr.bf16.mxu0 %v2192_v0  ;;  %v2161_v36 = vpack.c.bf16 %v1108_v35, %v1107_v34 }
 0x1cd   : > { %1945 = vmatmul.mubr.msk.f32.vlgmr.msra.gmra.mrb[6].mxu0 %vm870_vm4, %v704_v27  ;;  %v1211_v27 = vld [vmem:[%s2579_s14 + $0x38] sm:$0xff] }
 0x1ce   : > { %2093 = vmatpush3.bf16.msra.mxu0 %v2092_v38  ;;  %1966 = vmatprep.mubr.msk.f32.mxu0 %vm2193_vm0, %v2194_v1  ;;  %v2117_v28 = vpack.c.bf16 %v1211_v27, %v1210_v26  ;;  %v1110_v38 = vld [vmem:[%s2575_s10 + $0x38] sm:$0xff] }
 0x1cf   : > { %2094 = vmatprep.subr.bf16.mxu0 %v2192_v0  ;;  %v1213_v0 = vld [vmem:[%s2580_s15 + $0x8] sm:$0xff]  ;;  %v2165_v39 = vpack.c.bf16 %v1110_v38, %v1109_v37 }
 0x1d0   : > { %v2457_v1 = vpack.c.bf16 %v1213_v0, %v1212_v63 }
 0x1d2   : > { %2096 = vmatpush3.bf16.msra.mxu0 %v2095_v41 }
 0x1d3   : > { %2098 = vmatprep.subr.bf16.mxu0 %v2332_v12 }
 0x294   : > { %v793_v42 = vpop.f32.mrb[2].mxu0 }
 0x295   : > { %v1930_v43 = vpop.f32.mrb[3].mxu0  ;;  %1956 = vmatmul.mubr.msk.f32.vlgmr.msra.gmra.mrb[2].mxu1 %vm870_vm4, %v793_v42 }
 0x296   : > { %1971 = vmatprep.mubr.msk.f32.mxu1 %vm723_vm3, %v1101_v50 }
 0x298   : > { %v866_v44 = vpop.f32.mrb[4].mxu0 }
 0x299   : > { %v1935_v45 = vpop.f32.mrb[5].mxu0  ;;  %1967 = vmatmul.mubr.msk.f32.vlgmr.msra.gmra.mrb[8].mxu0 %vm870_vm4, %v866_v44  ;;  %v1216_v44 = vld [vmem:[%s2580_s15 + $0x20] sm:$0xff] }
 0x29a   : > { %2100 = vmatpush3.bf16.msra.mxu0 %v2332_v12  ;;  %1978 = vmatprep.mubr.msk.f32.mxu0 %vm560_vm1, %v1192_v48  ;;  %v1217_v45 = vld [vmem:[%s2580_s15 + $0x28] sm:$0xff]  ;;  %v1219_v48 = vld [vmem:[%s2580_s15 + $0x38] sm:$0xff] }
 0x29b   : > { %2122 = vmatprep.subr.bf16.mxu0 %v2121_v53 }
 0x29d   : > { %1979 = vmatmul.mubr.msk.f32.vlgmr.msra.gmra.mrb[10].mxu0 %vm560_vm1, %v1193_v49 }
 0x29e   : > { %2124 = vmatpush3.bf16.msra.mxu0 %v2121_v53 }
 0x29f   : > { %2126 = vmatprep.subr.bf16.mxu0 %v2125_v56 }
 0x2a0   : > { %v940_v46 = vpop.f32.mrb[6].mxu0 }
 0x2a1   : > { %v1946_v47 = vpop.f32.mrb[7].mxu0 }
 0x2a2   : > { %2128 = vmatpush3.bf16.msra.mxu0 %v2125_v56  ;;  %v1218_v47 = vld [vmem:[%s2580_s15 + $0x30] sm:$0xff] }
 0x2a3   : > { %2130 = vmatprep.subr.bf16.mxu0 %v2129_v59  ;;  %v2149_v49 = vpack.c.bf16 %v1219_v48, %v1218_v47 }
 0x2a6   : > { %2132 = vmatpush3.bf16.msra.mxu0 %v2129_v59 }
 0x2a7   : > { %2134 = vmatprep.subr.bf16.mxu0 %v2133_v62 }
 0x2aa   : > { %2136 = vmatpush3.bf16.msra.mxu0 %v2133_v62 }
 0x2ab   : > { %2138 = vmatprep.subr.bf16.mxu0 %v2457_v1 }
 0x368   : > { %v1013_v2 = vpop.f32.mrb[2].mxu1 }
 0x369   : > { %v1014_v3 = vadd.f32 %v1013_v2, %v940_v46  ;;  %v1957_v4 = vpop.f32.mrb[3].mxu1  ;;  %v2145_v46 = vpack.c.bf16 %v1217_v45, %v1216_v44 }
 0x36c   : > { %v1086_v6 = vpop.f32.mrb[8].mxu0 }
 0x36d   : > { %v1090_v7 = vadd.f32 %v1086_v6, %v1014_v3  ;;  %v1968_v8 = vpop.f32.mrb[9].mxu0 }
 0x36f   : > { %v1097_v9 = vadd.f32 %v1798_v5, %v1090_v7 }
 0x370   : > { %v1980_v41 = vpop.f32.mrb[10].mxu0 }
 0x371   : > { %vm1098_vm5 = vcmp.gt.f32.partialorder %v1097_v9, 0.0  ;;  %v1099_v13 = vmul.f32 0.05, %v1097_v9  ;;  %v1293_v42 = vpop.f32.mrb[11].mxu0 }
 0x372   : > { %2023 = vmatprep.mubr.msk.f32.mxu0 %vm634_vm2, %v1293_v42 }
 0x373   : > { %v1100_v16 = vsel %vm1098_vm5, %v1097_v9, %v1099_v13  ;;  %2024 = vmatmul.mubr.msk.f32.vlgmr.msra.gmra.mrb[12].mxu0 %vm634_vm2, %v1980_v41 }
 0x374   : > { %1969 = vmatprep.subr.mxu1 %v1100_v16  ;;  %2140 = vmatpush3.bf16.msra.mxu0 %v2457_v1 }
 0x375   : > { %1970 = vmatpush3.msra.mxu1 %v1100_v16 }
 0x376   : > { %1972 = vmatmul.mubr.msk.f32.vlgmr.msra.gmra.mrb[4].mxu1 %vm723_vm3, %v1102_v17  ;;  %2102 = vmatprep.subr.bf16.mxu1 %v2332_v12 }
 0x377   : > { %2104 = vmatpush3.bf16.msra.mxu1 %v2332_v12  ;;  %1985 = vmatprep.mubr.msk.f32.mxu1 %vm560_vm1, %v1194_v18  ;;  %v2113_v12 = vpack.c.bf16 %v1209_v25, %v1208_v24 }
 0x378   : > { %2106 = vmatprep.subr.bf16.mxu1 %v2105_v19 }
 0x37a   : > { %1986 = vmatmul.mubr.msk.f32.vlgmr.msra.gmra.mrb[6].mxu1 %vm560_vm1, %v1195_v22 }
 0x37b   : > { %2108 = vmatpush3.bf16.msra.mxu1 %v2105_v19  ;;  %2004 = vmatprep.mubr.msk.f32.mxu1 %vm634_vm2, %v2326_v10  ;;  %v1104_v10 = vld [vmem:[%s2575_s10 + $0x8] sm:$0xff] }
 0x37c   : > { %2110 = vmatprep.subr.bf16.mxu1 %v2109_v23  ;;  %v2153_v30 = vpack.c.bf16 %v1104_v10, %v1103_v29 }
 0x37f   : > { %2112 = vmatpush3.bf16.msra.mxu1 %v2109_v23 }
 0x380   : > { %2114 = vmatprep.subr.bf16.mxu1 %v2113_v12 }
 0x383   : > { %2116 = vmatpush3.bf16.msra.mxu1 %v2113_v12 }
 0x384   : > { %2118 = vmatprep.subr.bf16.mxu1 %v2117_v28 }
 0x387   : > { %2120 = vmatpush3.bf16.msra.mxu1 %v2117_v28 }
 0x388   : > { %2154 = vmatprep.subr.bf16.mxu1 %v2153_v30 }
 0x38a   : > { %2005 = vmatmul.mubr.msk.f32.vlgmr.msra.gmra.mrb[8].mxu1 %vm634_vm2, %v2328_v11  ;;  %v1214_v11 = vld [vmem:[%s2580_s15 + $0x10] sm:$0xff] }
 0x38b   : > { %2156 = vmatpush3.bf16.msra.mxu1 %v2153_v30  ;;  %v2141_v43 = vpack.c.bf16 %v1215_v40, %v1214_v11 }
 0x38c   : > { %2158 = vmatprep.subr.bf16.mxu1 %v2157_v33 }
 0x38d   : > { %2142 = vmatprep.subr.bf16.mxu0 %v2141_v43 }
 0x38e   : > { %2144 = vmatpush3.bf16.msra.mxu0 %v2141_v43 }
 0x38f   : > { %2160 = vmatpush3.bf16.msra.mxu1 %v2157_v33  ;;  %2146 = vmatprep.subr.bf16.mxu0 %v2145_v46 }
 0x390   : > { %2162 = vmatprep.subr.bf16.mxu1 %v2161_v36 }
 0x392   : > { %2148 = vmatpush3.bf16.msra.mxu0 %v2145_v46 }
 0x393   : > { %2164 = vmatpush3.bf16.msra.mxu1 %v2161_v36  ;;  %2150 = vmatprep.subr.bf16.mxu0 %v2149_v49 }
 0x394   : > { %2166 = vmatprep.subr.bf16.mxu1 %v2165_v39 }
 0x396   : > { %2152 = vmatpush3.bf16.msra.mxu0 %v2149_v49 }
 0x397   : > { %2168 = vmatpush3.bf16.msra.mxu1 %v2165_v39 }
 0x449   : > { %v1973_v50 = vpop.f32.mrb[4].mxu1 }
 0x44a   : > { %v1183_v51 = vpop.f32.mrb[5].mxu1 }
 0x44b   : > { %2061 = vmatprep.mubr.msk.f32.mxu1 %vm634_vm2, %v1183_v51 }
 0x44c   : > { %2062 = vmatmul.mubr.msk.f32.vlgmr.msra.gmra.mrb[10].mxu1 %vm634_vm2, %v1973_v50 }
 0x44d   : > { %v1987_v52 = vpop.f32.mrb[6].mxu1 }
 0x44e   : > { %v1374_v53 = vpop.f32.mrb[7].mxu1 }
 0x44f   : > { %2042 = vmatprep.mubr.msk.f32.mxu0 %vm634_vm2, %v1374_v53 }
 0x450   : > { %2043 = vmatmul.mubr.msk.f32.vlgmr.msra.gmra.mrb[12].mxu0 %vm634_vm2, %v1987_v52 }
 0x45d   : > { %v2006_v54 = vpop.f32.mrb[8].mxu1 }
 0x45e   : > { %v1455_v55 = vpop.f32.mrb[9].mxu1 }
 0x51f   : > { %v2063_v56 = vpop.f32.mrb[10].mxu1 }
 0x520   : > { %v1714_v57 = vpop.f32.mrb[11].mxu1 }
 0x523   : > { %v2044_v59 = vpop.f32.mrb[12].mxu0 }
 0x524   : > { %v2169_v60 = vadd.f32 %v2044_v59, %v2006_v54  ;;  %v1617_v61 = vpop.f32.mrb[13].mxu0 }
 0x525   : > { %v2170_v62 = vadd.f32 %v1617_v61, %v1455_v55 }
 0x526   : > { %v1635_v63 = vadd.f32 %v2169_v60, %v1811_v58 }
 0x527   : > { %v1634_v0 = vadd.f32 %v2170_v62, %v1811_v58 }
 0x528   : > { %vm1637_vm6 = vcmp.gt.f32.partialorder %v1635_v63, 0.0  ;;  %v1639_v1 = vmul.f32 0.05, %v1635_v63 }
 0x529   : > { %vm1636_vm7 = vcmp.gt.f32.partialorder %v1634_v0, 0.0  ;;  %v1638_v2 = vmul.f32 0.05, %v1634_v0 }
 0x52a   : > { %v1641_v3 = vsel %vm1637_vm6, %v1635_v63, %v1639_v1 }
 0x52b   : > { %v1720_v4 = vadd.f32 %v2063_v56, %v1641_v3  ;;  %v1640_v5 = vsel %vm1636_vm7, %v1634_v0, %v1638_v2 }
 0x52c   : > { %v1715_v6 = vadd.f32 %v1714_v57, %v1640_v5 }
 0x52d   : > { %v1724_v7 = vmul.f32 0.5, %v1720_v4 }
 0x52e   : > { %v1723_v8 = vmul.f32 0.5, %v1715_v6 }
 0x52f   : > { %1726 = vst [vmem:[%s548_s27 + $0x8] sm:$0xff] %v1724_v7 }
 0x530   : > { %1725 = vst [vmem:[%s548_s27] sm:$0xff] %v1723_v8 }
 0x531 PF: > { %s27_s24 = sadd.s32 1, %s2190_s24  }
 0x532   : > { %p24_p4 = scmp.ge.s32.totalorder %s27_s24, 4  }
 0x534   :  { %26 = sbr.rel (!%p24_p4) target bundleno = 3 (0x3), region = 118 }

// kernel: multi_layer_forward.3
= control target key start
LH: loop header
LB: loop body
LE: loop exit
PB: predicated region body
PF: predicated region fallthrough
CT: control target
= control target key end

     0   :  { %s2510_s24 = smov 0   ;;  %s2924_s0 = inlined_call_operand.vmem [shape: f32[2,16,128], index: 0, kind: input, shape index: {}]   ;;  %s2925_s1 = inlined_call_operand.vmem [shape: f32[8,16], index: 1, kind: input, shape index: {}]   ;;  %s2926_s2 = inlined_call_operand.vmem [shape: f32[128,64], index: 2, kind: input, shape index: {}]   ;;  %s2927_s3 = inlined_call_operand.vmem [shape: f32[8,8], index: 3, kind: input, shape index: {}]   ;;  %s2928_s4 = inlined_call_operand.vmem [shape: f32[8,8], index: 4, kind: input, shape index: {}]   ;;  %s2929_s5 = inlined_call_operand.vmem [shape: f32[64,64], index: 5, kind: input, shape index: {}]   ;;  %s2930_s6 = inlined_call_operand.vmem [shape: f32[64,64], index: 6, kind: input, shape index: {}]   ;;  %s2931_s7 = inlined_call_operand.vmem [shape: f32[64,64], index: 7, kind: input, shape index: {}]   ;;  %s2932_s8 = inlined_call_operand.vmem [shape: f32[1,64], index: 8, kind: input, shape index: {}]   ;;  %s2933_s9 = inlined_call_operand.vmem [shape: f32[16,8], index: 9, kind: input, shape index: {}]   ;;  %s2934_s10 = inlined_call_operand.vmem [shape: f32[64,128], index: 10, kind: input, shape index: {}]   ;;  %s2935_s11 = inlined_call_operand.vmem [shape: f32[16,16], index: 11, kind: input, shape index: {}]   ;;  %s2936_s12 = inlined_call_operand.vmem [shape: f32[16,16], index: 12, kind: input, shape index: {}]   ;;  %s2937_s13 = inlined_call_operand.vmem [shape: f32[128,128], index: 13, kind: input, shape index: {}]   ;;  %s2938_s14 = inlined_call_operand.vmem [shape: f32[128,128], index: 14, kind: input, shape index: {}]   ;;  %s2939_s15 = inlined_call_operand.vmem [shape: f32[128,128], index: 15, kind: input, shape index: {}]   ;;  %s2940_s16 = inlined_call_operand.vmem [shape: f32[1,128], index: 16, kind: input, shape index: {}]   ;;  %s2941_s17 = inlined_call_operand.vmem [shape: f32[2,16,128], index: 17, kind: output, shape index: {}]  }
   0x1   :  { %2942 = sst [smem:[#allocation2_spill]] %s2924_s0 }
   0x2   :  { %2943 = sst [smem:[#allocation3_spill]] %s2925_s1 }
   0x3 LB: > { %s1804_s25 = sadd.s32 4294967295, %s2415_s24   ;;  %p1808_p0 = scmp.ge.s32.totalorder %s2415_s24, 1  ;;  %s2415_s24 = sphi %s2510_s24, %s27_s24  }
   0x4   : > { %p487_p1 = scmp.lt.s32.totalorder %s2415_s24, 3 }
   0x6   : > { %p488_p2 = pnand %p1808_p0, %p487_p1 }
   0x7   : > { %p539_p3 = scmp.lt.s32.totalorder (!%p488_p2), %s1804_s25, 1  ;;  %v2417_v0 = vmov (!%p488_p2), 0.0|0.0   ;;  %vm2418_vm0 = vmmov (!%p488_p2), 0   ;;  %v2419_v1 = vmov (!%p488_p2), 0.0   ;;  %s2944_s29 = sld [smem:[#allocation2_spill]] (!%p488_p2)  ;;  %v552_v2 = vld [vmem:[%s2926_s2] sm:$0xff] (!%p488_p2) }
   0x8   : > { %491 = sbr.rel (%p488_p2) target bundleno = 1359 (0x54f), region = 88  ;;  %2211 = vmatprep.subr.bf16.mxu1 (!%p488_p2), %v2417_v0  ;;  %1963 = vmatprep.mubr.msk.f32.mxu1 (!%p488_p2), %vm2418_vm0, %v2419_v1  ;;  %v553_v5 = vld [vmem:[%s2926_s2 + $0x8] sm:$0xff] (!%p488_p2)  ;;  %s2945_s22 = sld [smem:[#allocation3_spill]] (!%p488_p2)  ;;  %vm568_vm1 = vcmask (!%p488_p2), 130048   ;;  %v554_v9 = vld [vmem:[%s2926_s2 + $0x10] sm:$0xff] (!%p488_p2)  ;;  %v555_v10 = vld [vmem:[%s2926_s2 + $0x18] sm:$0xff] (!%p488_p2) }
   0x9   : > { %2006 = vmatprep.subr.mxu0 (!%p488_p2), %v2419_v1  ;;  %2008 = vmatprep.mubr.msk.f32.mxu0 (!%p488_p2), %vm2418_vm0, %v2419_v1  ;;  %v2215_v8 = vpack.c.bf16 (!%p488_p2), %v553_v5, %v552_v2  ;;  %v2218_v11 = vpack.c.bf16 (!%p488_p2), %v555_v10, %v554_v9  ;;  %v556_v12 = vld [vmem:[%s2926_s2 + $0x20] sm:$0xff] (!%p488_p2)  ;;  %v557_v13 = vld [vmem:[%s2926_s2 + $0x28] sm:$0xff] (!%p488_p2)  ;;  %v558_v15 = vld [vmem:[%s2926_s2 + $0x30] sm:$0xff] (!%p488_p2)  ;;  %vm739_vm2 = vcmask (!%p488_p2), 64512   ;;  %vm886_vm3 = vcmask (!%p488_p2), 523264  }
   0xa   : > { %v2221_v14 = vpack.c.bf16 (!%p488_p2), %v557_v13, %v556_v12  ;;  %v559_v16 = vld [vmem:[%s2926_s2 + $0x38] sm:$0xff] (!%p488_p2)  ;;  %v560_v18 = vld [vmem:[%s2926_s2 + $0x40] sm:$0xff] (!%p488_p2)  ;;  %v561_v19 = vld [vmem:[%s2926_s2 + $0x48] sm:$0xff] (!%p488_p2) }
   0xb   : > { %v2224_v17 = vpack.c.bf16 (!%p488_p2), %v559_v16, %v558_v15  ;;  %v2227_v20 = vpack.c.bf16 (!%p488_p2), %v561_v19, %v560_v18  ;;  %v562_v21 = vld [vmem:[%s2926_s2 + $0x50] sm:$0xff] (!%p488_p2)  ;;  %v563_v22 = vld [vmem:[%s2926_s2 + $0x58] sm:$0xff] (!%p488_p2)  ;;  %v564_v24 = vld [vmem:[%s2926_s2 + $0x60] sm:$0xff] (!%p488_p2) }
   0xc   : > { %v2230_v23 = vpack.c.bf16 (!%p488_p2), %v563_v22, %v562_v21  ;;  %v565_v25 = vld [vmem:[%s2926_s2 + $0x68] sm:$0xff] (!%p488_p2)  ;;  %v566_v27 = vld [vmem:[%s2926_s2 + $0x70] sm:$0xff] (!%p488_p2)  ;;  %v567_v28 = vld [vmem:[%s2926_s2 + $0x78] sm:$0xff] (!%p488_p2) }
   0xd   : > { %v2233_v26 = vpack.c.bf16 (!%p488_p2), %v565_v25, %v564_v24  ;;  %v2236_v29 = vpack.c.bf16 (!%p488_p2), %v567_v28, %v566_v27  ;;  %v722_v32 = vld [vmem:[%s2930_s6] sm:$0xff] (!%p488_p2)  ;;  %v723_v33 = vld [vmem:[%s2930_s6 + $0x8] sm:$0xff] (!%p488_p2)  ;;  %v724_v41 = vld [vmem:[%s2930_s6 + $0x10] sm:$0xff] (!%p488_p2) }
   0xe   : > { %v551_v7 = vld [vmem:[%s2945_s22] sm:$0xff] (!%p488_p2)  ;;  %v731_v35 = vld [vmem:[%s2931_s7 + $0x8] sm:$0xff] (!%p488_p2)  ;;  %v2239_v39 = vpack.c.bf16 (!%p488_p2), %v723_v33, %v722_v32  ;;  %v725_v42 = vld [vmem:[%s2930_s6 + $0x18] sm:$0xff] (!%p488_p2) }
   0xf   : > { %s2947_s25 = smov (!%p539_p3, %s1804_s25), 1  ;;  %v730_v34 = vld [vmem:[%s2931_s7] sm:$0xff]  ;;  %v732_v44 = vld [vmem:[%s2931_s7 + $0x10] sm:$0xff]  ;;  %v733_v45 = vld [vmem:[%s2931_s7 + $0x18] sm:$0xff]  ;;  %v2242_v46 = vpack.c.bf16 %v725_v42, %v724_v41 }
  0x10   : > { %s1831_s26 = sshll.u32 %s2947_s25, 4  ;;  %v712_v36 = vld [vmem:[%s2927_s3] sm:$0xff]  ;;  %v2263_v43 = vpack.c.bf16 %v731_v35, %v730_v34  ;;  %v727_v48 = vld [vmem:[%s2930_s6 + $0x28] sm:$0xff]  ;;  %v2266_v49 = vpack.c.bf16 %v733_v45, %v732_v44  ;;  %v728_v53 = vld [vmem:[%s2930_s6 + $0x30] sm:$0xff] }
  0x11   : > { %s543_s0 = scalar_lea.vmem %s2944_s29, %s1831_s26  ;;  %v713_v38 = vld [vmem:[%s2928_s4] sm:$0xff]  ;;  %v735_v51 = vld [vmem:[%s2931_s7 + $0x28] sm:$0xff]  ;;  %v729_v54 = vld [vmem:[%s2930_s6 + $0x38] sm:$0xff]  ;;  %s548_s18 = scalar_lea.vmem %s2941_s17, %s1831_s26 }
  0x12   : > { %v2535_v3 = vld [vmem:[%s543_s0] sm:$0xff]  ;;  %v2537_v4 = vld [vmem:[%s543_s0 + $0x8] sm:$0xff]  ;;  %v736_v56 = vld [vmem:[%s2931_s7 + $0x30] sm:$0xff]  ;;  %v2248_v58 = vpack.c.bf16 %v729_v54, %v728_v53 }
  0x13   : > { %v2544_v6 = vpack.c.bf16 %v2537_v4, %v2535_v3  ;;  %v726_v47 = vld [vmem:[%s2930_s6 + $0x20] sm:$0xff]  ;;  %v737_v57 = vld [vmem:[%s2931_s7 + $0x38] sm:$0xff]  ;;  %v715_v60 = vld [vmem:[%s2929_s5 + $0x8] sm:$0xff] }
  0x14   : > { %v734_v50 = vld [vmem:[%s2931_s7 + $0x20] sm:$0xff]  ;;  %v2245_v52 = vpack.c.bf16 %v727_v48, %v726_v47  ;;  %v2272_v61 = vpack.c.bf16 %v737_v57, %v736_v56  ;;  %v716_v63 = vld [vmem:[%s2929_s5 + $0x10] sm:$0xff]  ;;  %v717_v2 = vld [vmem:[%s2929_s5 + $0x18] sm:$0xff] }
  0x15   : > { %2213 = vmatpush3.bf16.msra.mxu1 %v2544_v6  ;;  %v2269_v55 = vpack.c.bf16 %v735_v51, %v734_v50  ;;  %v714_v59 = vld [vmem:[%s2929_s5] sm:$0xff]  ;;  %v2254_v5 = vpack.c.bf16 %v717_v2, %v716_v63  ;;  %v720_v10 = vld [vmem:[%s2929_s5 + $0x30] sm:$0xff]  ;;  %v1211_v19 = vld [vmem:[%s2936_s12 + $0x8] sm:$0xff] }
  0x16   : > { %2214 = vmatprep.subr.bf16.mxu1 %v2417_v0  ;;  %v2251_v62 = vpack.c.bf16 %v715_v60, %v714_v59  ;;  %v1117_v18 = vld [vmem:[%s2933_s9] sm:$0xff]  ;;  %v1229_v21 = vld [vmem:[%s2938_s14 + $0x8] sm:$0xff]  ;;  %v1230_v22 = vld [vmem:[%s2938_s14 + $0x10] sm:$0xff] }
  0x17   : > { %v1233_v27 = vld [vmem:[%s2938_s14 + $0x28] sm:$0xff]  ;;  %v1236_v32 = vld [vmem:[%s2938_s14 + $0x40] sm:$0xff]  ;;  %v1238_v34 = vld [vmem:[%s2938_s14 + $0x50] sm:$0xff] }
  0x18   : > { %1964 = vmatmul.mubr.msk.f32.vlgmr.msra.gmra.mrb[0].mxu1 %vm568_vm1, %v551_v7  ;;  %v718_v7 = vld [vmem:[%s2929_s5 + $0x20] sm:$0xff]  ;;  %v1239_v35 = vld [vmem:[%s2938_s14 + $0x58] sm:$0xff]  ;;  %v1120_v44 = vld [vmem:[%s2934_s10 + $0x8] sm:$0xff] }
  0x19   : > { %2216 = vmatpush3.bf16.msra.mxu1 %v2215_v8  ;;  %1998 = vmatprep.mubr.msk.f32.mxu1 %vm2418_vm0, %v2419_v1  ;;  %v719_v8 = vld [vmem:[%s2929_s5 + $0x28] sm:$0xff]  ;;  %v1243_v41 = vld [vmem:[%s2938_s14 + $0x78] sm:$0xff]  ;;  %v1212_v63 = vld [vmem:[%s2937_s13] sm:$0xff] }
  0x1a   : > { %2217 = vmatprep.subr.bf16.mxu1 %v2417_v0  ;;  %v2257_v9 = vpack.c.bf16 %v719_v8, %v718_v7  ;;  %v1122_v47 = vld [vmem:[%s2934_s10 + $0x18] sm:$0xff]  ;;  %v1124_v50 = vld [vmem:[%s2934_s10 + $0x28] sm:$0xff]  ;;  %v1208_v8 = vld [vmem:[%s2935_s11] sm:$0xff] }
  0x1b   : > { %v1126_v53 = vld [vmem:[%s2934_s10 + $0x38] sm:$0xff]  ;;  %v1213_v2 = vld [vmem:[%s2937_s13 + $0x8] sm:$0xff] }
  0x1c   : > { %v1118_v7 = vld [vmem:[%s2933_s9 + $0x8] sm:$0xff] }
  0x1d   : > { %2219 = vmatpush3.bf16.msra.mxu1 %v2218_v11 }
  0x1e   : > { %2220 = vmatprep.subr.bf16.mxu1 %v2417_v0 }
  0x21   : > { %2222 = vmatpush3.bf16.msra.mxu1 %v2221_v14 }
  0x22   : > { %2223 = vmatprep.subr.bf16.mxu1 %v2417_v0 }
  0x25   : > { %2225 = vmatpush3.bf16.msra.mxu1 %v2224_v17 }
  0x26   : > { %2226 = vmatprep.subr.bf16.mxu1 %v2417_v0 }
  0x29   : > { %2228 = vmatpush3.bf16.msra.mxu1 %v2227_v20  ;;  %v1228_v20 = vld [vmem:[%s2938_s14] sm:$0xff] }
  0x2a   : > { %2229 = vmatprep.subr.bf16.mxu1 %v2417_v0  ;;  %v2282_v24 = vpack.c.bf16 %v1229_v21, %v1228_v20  ;;  %v1222_v20 = vld [vmem:[%s2937_s13 + $0x50] sm:$0xff]  ;;  %v1223_v21 = vld [vmem:[%s2937_s13 + $0x58] sm:$0xff] }
  0x2d   : > { %2231 = vmatpush3.bf16.msra.mxu1 %v2230_v23  ;;  %v1231_v23 = vld [vmem:[%s2938_s14 + $0x18] sm:$0xff] }
  0x2e   : > { %2232 = vmatprep.subr.bf16.mxu1 %v2417_v0  ;;  %v2286_v25 = vpack.c.bf16 %v1231_v23, %v1230_v22  ;;  %v2334_v22 = vpack.c.bf16 %v1223_v21, %v1222_v20  ;;  %v1224_v23 = vld [vmem:[%s2937_s13 + $0x60] sm:$0xff] }
  0x31   : > { %2234 = vmatpush3.bf16.msra.mxu1 %v2233_v26  ;;  %v1232_v26 = vld [vmem:[%s2938_s14 + $0x20] sm:$0xff] }
  0x32   : > { %2235 = vmatprep.subr.bf16.mxu1 %v2417_v0  ;;  %v2290_v28 = vpack.c.bf16 %v1233_v27, %v1232_v26  ;;  %v1226_v26 = vld [vmem:[%s2937_s13 + $0x70] sm:$0xff]  ;;  %v1227_v27 = vld [vmem:[%s2937_s13 + $0x78] sm:$0xff] }
  0x35   : > { %2237 = vmatpush3.bf16.msra.mxu1 %v2236_v29  ;;  %v1234_v29 = vld [vmem:[%s2938_s14 + $0x30] sm:$0xff] }
  0x36   : > { %2001 = vmatprep.subr.mxu1 %v2419_v1 }
  0xeb   : > { %v638_v30 = vpop.f32.mrb[0].mxu1 }
  0xec   : > { %v1965_v31 = vpop.f32.mrb[1].mxu1  ;;  %1999 = vmatmul.mubr.f32.vlgmr.msra.gmra.mrb[2].mxu1 %v638_v30  ;;  %v1235_v30 = vld [vmem:[%s2938_s14 + $0x38] sm:$0xff] }
  0xed   : > { %2003 = vmatprep.mubr.msk.f32.mxu1 %vm2418_vm0, %v2419_v1  ;;  %v2294_v31 = vpack.c.bf16 %v1235_v30, %v1234_v29  ;;  %v1244_v29 = vld [vmem:[%s2939_s15] sm:$0xff]  ;;  %v1245_v30 = vld [vmem:[%s2939_s15 + $0x8] sm:$0xff] }
 0x1bf   : > { %v708_v37 = vpop.f32.mrb[2].mxu1 }
 0x1c0   : > { %v2000_v40 = vpop.f32.mrb[3].mxu1  ;;  %2002 = vmatpush3.msra.mxu1 %v708_v37  ;;  %2007 = vmatpush3.msra.mxu0 %v708_v37 }
 0x1c1   : > { %2004 = vmatmul.mubr.msk.f32.vlgmr.msra.gmra.mrb[4].mxu1 %vm739_vm2, %v712_v36  ;;  %2238 = vmatprep.subr.bf16.mxu0 %v2417_v0  ;;  %v2302_v36 = vpack.c.bf16 %v1239_v35, %v1238_v34  ;;  %v1242_v40 = vld [vmem:[%s2938_s14 + $0x70] sm:$0xff] }
 0x1c2   : > { %2009 = vmatmul.mubr.msk.f32.vlgmr.msra.gmra.mrb[0].mxu0 %vm739_vm2, %v713_v38  ;;  %2262 = vmatprep.subr.bf16.mxu1 %v2417_v0  ;;  %v1241_v38 = vld [vmem:[%s2938_s14 + $0x68] sm:$0xff]  ;;  %v2310_v42 = vpack.c.bf16 %v1243_v41, %v1242_v40 }
 0x1c3   : > { %2240 = vmatpush3.bf16.msra.mxu0 %v2239_v39  ;;  %2027 = vmatprep.mubr.msk.f32.mxu0 %vm2418_vm0, %v2419_v1 }
 0x1c4   : > { %2241 = vmatprep.subr.bf16.mxu0 %v2417_v0  ;;  %2264 = vmatpush3.bf16.msra.mxu1 %v2263_v43  ;;  %v1119_v43 = vld [vmem:[%s2934_s10] sm:$0xff] }
 0x1c5   : > { %2265 = vmatprep.subr.bf16.mxu1 %v2417_v0  ;;  %2065 = vmatprep.mubr.msk.f32.mxu1 %vm2418_vm0, %v2419_v1  ;;  %v2378_v45 = vpack.c.bf16 %v1120_v44, %v1119_v43  ;;  %v1249_v43 = vld [vmem:[%s2939_s15 + $0x28] sm:$0xff] }
 0x1c7   : > { %2243 = vmatpush3.bf16.msra.mxu0 %v2242_v46  ;;  %v1121_v46 = vld [vmem:[%s2934_s10 + $0x10] sm:$0xff] }
 0x1c8   : > { %2244 = vmatprep.subr.bf16.mxu0 %v2417_v0  ;;  %2267 = vmatpush3.bf16.msra.mxu1 %v2266_v49  ;;  %v2382_v48 = vpack.c.bf16 %v1122_v47, %v1121_v46  ;;  %v1123_v49 = vld [vmem:[%s2934_s10 + $0x20] sm:$0xff]  ;;  %v1251_v46 = vld [vmem:[%s2939_s15 + $0x38] sm:$0xff] }
 0x1c9   : > { %2268 = vmatprep.subr.bf16.mxu1 %v2417_v0  ;;  %v2386_v51 = vpack.c.bf16 %v1124_v50, %v1123_v49  ;;  %v1253_v49 = vld [vmem:[%s2939_s15 + $0x48] sm:$0xff] }
 0x1cb   : > { %2246 = vmatpush3.bf16.msra.mxu0 %v2245_v52  ;;  %v1125_v52 = vld [vmem:[%s2934_s10 + $0x30] sm:$0xff] }
 0x1cc   : > { %2247 = vmatprep.subr.bf16.mxu0 %v2417_v0  ;;  %2270 = vmatpush3.bf16.msra.mxu1 %v2269_v55  ;;  %v2390_v54 = vpack.c.bf16 %v1126_v53, %v1125_v52  ;;  %v1255_v52 = vld [vmem:[%s2939_s15 + $0x58] sm:$0xff] }
 0x1cd   : > { %2271 = vmatprep.subr.bf16.mxu1 %v2417_v0 }
 0x1cf   : > { %2249 = vmatpush3.bf16.msra.mxu0 %v2248_v58  ;;  %v1819_v58 = vld [vmem:[%s2932_s8] ss:$0 sm:$0xff] }
 0x1d0   : > { %2250 = vmatprep.subr.bf16.mxu0 %v2417_v0  ;;  %2273 = vmatpush3.bf16.msra.mxu1 %v2272_v61 }
 0x1d1   : > { %2279 = vmatprep.subr.bf16.mxu1 %v2544_v6 }
 0x1d2   : > { %2028 = vmatmul.mubr.msk.f32.vlgmr.msra.gmra.mrb[2].mxu0 %vm886_vm3, %v708_v37  ;;  %v1240_v37 = vld [vmem:[%s2938_s14 + $0x60] sm:$0xff] }
 0x1d3   : > { %2252 = vmatpush3.bf16.msra.mxu0 %v2251_v62  ;;  %2046 = vmatprep.mubr.msk.f32.mxu0 %vm2418_vm0, %v2419_v1  ;;  %v721_v1 = vld [vmem:[%s2929_s5 + $0x38] sm:$0xff]  ;;  %v2306_v39 = vpack.c.bf16 %v1241_v38, %v1240_v37  ;;  %v1246_v37 = vld [vmem:[%s2939_s15 + $0x10] sm:$0xff] }
 0x1d4   : > { %2253 = vmatprep.subr.bf16.mxu0 %v2417_v0  ;;  %v2260_v11 = vpack.c.bf16 %v721_v1, %v720_v10  ;;  %v1214_v10 = vld [vmem:[%s2937_s13 + $0x10] sm:$0xff]  ;;  %v1215_v1 = vld [vmem:[%s2937_s13 + $0x18] sm:$0xff] }
 0x1d5   : > { %v1247_v38 = vld [vmem:[%s2939_s15 + $0x18] sm:$0xff] }
 0x1d6   : > { %v2350_v41 = vpack.c.bf16 %v1247_v38, %v1246_v37 }
 0x1d7   : > { %2255 = vmatpush3.bf16.msra.mxu0 %v2254_v5 }
 0x1d8   : > { %2256 = vmatprep.subr.bf16.mxu0 %v2417_v0 }
 0x1db   : > { %2258 = vmatpush3.bf16.msra.mxu0 %v2257_v9  ;;  %v2314_v9 = vpack.c.bf16 %v1213_v2, %v1212_v63 }
 0x1dc   : > { %2259 = vmatprep.subr.bf16.mxu0 %v2417_v0  ;;  %v1210_v0 = vld [vmem:[%s2936_s12] sm:$0xff] }
 0x1df   : > { %2261 = vmatpush3.bf16.msra.mxu0 %v2260_v11  ;;  %v1209_v11 = vld [vmem:[%s2935_s11 + $0x8] sm:$0xff] }
 0x294   : > { %v809_v12 = vpop.f32.mrb[4].mxu1 }
 0x295   : > { %v2005_v13 = vpop.f32.mrb[5].mxu1  ;;  %v882_v14 = vpop.f32.mrb[0].mxu0  ;;  %2047 = vmatmul.mubr.msk.f32.vlgmr.msra.gmra.mrb[4].mxu0 %vm886_vm3, %v809_v12  ;;  %v2318_v12 = vpack.c.bf16 %v1215_v1, %v1214_v10 }
 0x296   : > { %v2010_v15 = vpop.f32.mrb[1].mxu0  ;;  %2066 = vmatmul.mubr.msk.f32.vlgmr.msra.gmra.mrb[6].mxu1 %vm886_vm3, %v882_v14  ;;  %2070 = vmatprep.mubr.msk.f32.mxu0 %vm739_vm2, %v1117_v18  ;;  %v1216_v13 = vld [vmem:[%s2937_s13 + $0x20] sm:$0xff]  ;;  %v1217_v14 = vld [vmem:[%s2937_s13 + $0x28] sm:$0xff] }
 0x297   : > { %2281 = vmatpush3.bf16.msra.mxu1 %v2544_v6  ;;  %2084 = vmatprep.mubr.msk.f32.mxu1 %vm568_vm1, %v1210_v0  ;;  %v1218_v15 = vld [vmem:[%s2937_s13 + $0x30] sm:$0xff]  ;;  %v1220_v18 = vld [vmem:[%s2937_s13 + $0x40] sm:$0xff]  ;;  %v1221_v0 = vld [vmem:[%s2937_s13 + $0x48] sm:$0xff] }
 0x298   : > { %2283 = vmatprep.subr.bf16.mxu1 %v2282_v24 }
 0x29a   : > { %2085 = vmatmul.mubr.msk.f32.vlgmr.msra.gmra.mrb[8].mxu1 %vm568_vm1, %v1211_v19  ;;  %v2330_v19 = vpack.c.bf16 %v1221_v0, %v1220_v18 }
 0x29b   : > { %2119 = vmatprep.mubr.f32.mxu1 %v2535_v3  ;;  %2285 = vmatpush3.bf16.msra.mxu1 %v2282_v24  ;;  %v1237_v3 = vld [vmem:[%s2938_s14 + $0x48] sm:$0xff] }
 0x29c   : > { %2287 = vmatprep.subr.bf16.mxu1 %v2286_v25  ;;  %v2298_v33 = vpack.c.bf16 %v1237_v3, %v1236_v32  ;;  %v1225_v24 = vld [vmem:[%s2937_s13 + $0x68] sm:$0xff] }
 0x29f   : > { %2289 = vmatpush3.bf16.msra.mxu1 %v2286_v25  ;;  %v2338_v25 = vpack.c.bf16 %v1225_v24, %v1224_v23 }
 0x2a0   : > { %2291 = vmatprep.subr.bf16.mxu1 %v2290_v28 }
 0x2a3   : > { %2293 = vmatpush3.bf16.msra.mxu1 %v2290_v28  ;;  %v2342_v28 = vpack.c.bf16 %v1227_v27, %v1226_v26 }
 0x2a4   : > { %2295 = vmatprep.subr.bf16.mxu1 %v2294_v31 }
 0x2a5   : > { %v2709_v16 = vpop.f32.mrb[2].mxu0 }
 0x2a6   : > { %v2029_v17 = vpop.f32.mrb[3].mxu0 }
 0x2a7   : > { %2297 = vmatpush3.bf16.msra.mxu1 %v2294_v31  ;;  %v2346_v31 = vpack.c.bf16 %v1245_v30, %v1244_v29 }
 0x2a8   : > { %2299 = vmatprep.subr.bf16.mxu1 %v2298_v33 }
 0x2ab   : > { %2301 = vmatpush3.bf16.msra.mxu1 %v2298_v33 }
 0x2ac   : > { %2303 = vmatprep.subr.bf16.mxu1 %v2302_v36 }
 0x2af   : > { %2305 = vmatpush3.bf16.msra.mxu1 %v2302_v36 }
 0x2b0   : > { %2307 = vmatprep.subr.bf16.mxu1 %v2306_v39 }
 0x2b3   : > { %2309 = vmatpush3.bf16.msra.mxu1 %v2306_v39 }
 0x2b4   : > { %2311 = vmatprep.subr.bf16.mxu1 %v2310_v42 }
 0x2b7   : > { %2313 = vmatpush3.bf16.msra.mxu1 %v2310_v42  ;;  %v1248_v42 = vld [vmem:[%s2939_s15 + $0x20] sm:$0xff] }
 0x2b8   : > { %2379 = vmatprep.subr.bf16.mxu1 %v2378_v45  ;;  %v2354_v44 = vpack.c.bf16 %v1249_v43, %v1248_v42 }
 0x2ba   : > { %2120 = vmatmul.mubr.f32.vlgmr.msra.gmra.mrb[10].mxu1 %v2537_v4 }
 0x2bb   : > { %2381 = vmatpush3.bf16.msra.mxu1 %v2378_v45  ;;  %v1250_v45 = vld [vmem:[%s2939_s15 + $0x30] sm:$0xff] }
 0x2bc   : > { %2383 = vmatprep.subr.bf16.mxu1 %v2382_v48  ;;  %v2358_v47 = vpack.c.bf16 %v1251_v46, %v1250_v45 }
 0x2bf   : > { %2385 = vmatpush3.bf16.msra.mxu1 %v2382_v48  ;;  %v1252_v48 = vld [vmem:[%s2939_s15 + $0x40] sm:$0xff] }
 0x2c0   : > { %2387 = vmatprep.subr.bf16.mxu1 %v2386_v51  ;;  %v2362_v50 = vpack.c.bf16 %v1253_v49, %v1252_v48 }
 0x2c3   : > { %2389 = vmatpush3.bf16.msra.mxu1 %v2386_v51  ;;  %v1254_v51 = vld [vmem:[%s2939_s15 + $0x50] sm:$0xff] }
 0x2c4   : > { %2391 = vmatprep.subr.bf16.mxu1 %v2390_v54  ;;  %v2366_v53 = vpack.c.bf16 %v1255_v52, %v1254_v51 }
 0x2c7   : > { %2393 = vmatpush3.bf16.msra.mxu1 %v2390_v54  ;;  %v1256_v54 = vld [vmem:[%s2939_s15 + $0x60] sm:$0xff] }
 0x368   : > { %v1029_v55 = vpop.f32.mrb[4].mxu0 }
 0x369   : > { %v1030_v4 = vadd.f32 %v1029_v55, %v2709_v16  ;;  %v2048_v56 = vpop.f32.mrb[5].mxu0  ;;  %v1102_v57 = vpop.f32.mrb[6].mxu1  ;;  %v1219_v16 = vld [vmem:[%s2937_s13 + $0x38] sm:$0xff]  ;;  %v1257_v55 = vld [vmem:[%s2939_s15 + $0x68] sm:$0xff] }
 0x36a   : > { %v2067_v59 = vpop.f32.mrb[7].mxu1  ;;  %v2326_v17 = vpack.c.bf16 %v1219_v16, %v1218_v15  ;;  %v1258_v56 = vld [vmem:[%s2939_s15 + $0x70] sm:$0xff] }
 0x36b   : > { %v1106_v60 = vadd.f32 %v1102_v57, %v1030_v4  ;;  %v2370_v4 = vpack.c.bf16 %v1257_v55, %v1256_v54  ;;  %v1259_v57 = vld [vmem:[%s2939_s15 + $0x78] sm:$0xff] }
 0x36d   : > { %v1113_v61 = vadd.f32 %v1819_v58, %v1106_v60  ;;  %v2086_v32 = vpop.f32.mrb[8].mxu1  ;;  %v2374_v58 = vpack.c.bf16 %v1259_v57, %v1258_v56 }
 0x36e   : > { %v1414_v3 = vpop.f32.mrb[9].mxu1 }
 0x36f   : > { %vm1114_vm4 = vcmp.gt.f32.partialorder %v1113_v61, 0.0  ;;  %v1115_v62 = vmul.f32 0.05, %v1113_v61 }
 0x371   : > { %v1116_v5 = vsel %vm1114_vm4, %v1113_v61, %v1115_v62  ;;  %v1826_v61 = vld [vmem:[%s2940_s16] ss:$0 sm:$0xff] }
 0x372   : > { %2068 = vmatprep.subr.mxu0 %v1116_v5 }
 0x373   : > { %2069 = vmatpush3.msra.mxu0 %v1116_v5 }
 0x374   : > { %2071 = vmatmul.mubr.msk.f32.vlgmr.msra.gmra.mrb[6].mxu0 %vm739_vm2, %v1118_v7  ;;  %2275 = vmatprep.subr.bf16.mxu0 %v2544_v6 }
 0x375   : > { %2277 = vmatpush3.bf16.msra.mxu0 %v2544_v6  ;;  %2077 = vmatprep.mubr.msk.f32.mxu0 %vm568_vm1, %v1208_v8  ;;  %v2322_v6 = vpack.c.bf16 %v1217_v14, %v1216_v13 }
 0x376   : > { %2315 = vmatprep.subr.bf16.mxu0 %v2314_v9 }
 0x378   : > { %2078 = vmatmul.mubr.msk.f32.vlgmr.msra.gmra.mrb[8].mxu0 %vm568_vm1, %v1209_v11 }
 0x379   : > { %2317 = vmatpush3.bf16.msra.mxu0 %v2314_v9 }
 0x37a   : > { %2319 = vmatprep.subr.bf16.mxu0 %v2318_v12 }
 0x37d   : > { %2321 = vmatpush3.bf16.msra.mxu0 %v2318_v12 }
 0x37e   : > { %2323 = vmatprep.subr.bf16.mxu0 %v2322_v6 }
 0x381   : > { %2325 = vmatpush3.bf16.msra.mxu0 %v2322_v6 }
 0x382   : > { %2327 = vmatprep.subr.bf16.mxu0 %v2326_v17 }
 0x385   : > { %2329 = vmatpush3.bf16.msra.mxu0 %v2326_v17 }
 0x386   : > { %2331 = vmatprep.subr.bf16.mxu0 %v2330_v19 }
 0x389   : > { %2333 = vmatpush3.bf16.msra.mxu0 %v2330_v19 }
 0x38a   : > { %2335 = vmatprep.subr.bf16.mxu0 %v2334_v22 }
 0x38d   : > { %2337 = vmatpush3.bf16.msra.mxu0 %v2334_v22  ;;  %v2121_v33 = vpop.f32.mrb[10].mxu1 }
 0x38e   : > { %2339 = vmatprep.subr.bf16.mxu0 %v2338_v25  ;;  %v1489_v34 = vpop.f32.mrb[11].mxu1 }
 0x391   : > { %2341 = vmatpush3.bf16.msra.mxu0 %v2338_v25 }
 0x392   : > { %2343 = vmatprep.subr.bf16.mxu0 %v2342_v28 }
 0x395   : > { %2345 = vmatpush3.bf16.msra.mxu0 %v2342_v28 }
 0x396   : > { %2347 = vmatprep.subr.bf16.mxu0 %v2346_v31 }
 0x447   : > { %v2072_v35 = vpop.f32.mrb[6].mxu0 }
 0x448   : > { %v1199_v36 = vpop.f32.mrb[7].mxu0 }
 0x449   : > { %2208 = vmatprep.mubr.msk.f32.mxu1 %vm886_vm3, %v1199_v36 }
 0x44a   : > { %2209 = vmatmul.mubr.msk.f32.vlgmr.msra.gmra.mrb[12].mxu1 %vm886_vm3, %v2072_v35 }
 0x44b   : > { %v2079_v39 = vpop.f32.mrb[8].mxu0 }
 0x44c   : > { %v1333_v40 = vpop.f32.mrb[9].mxu0 }
 0x44d   : > { %2154 = vmatprep.mubr.f32.mxu0 %v1333_v40 }
 0x44e   : > { %2155 = vmatmul.mubr.f32.vlgmr.msra.gmra.mrb[10].mxu0 %v2079_v39 }
 0x44f   : > { %2349 = vmatpush3.bf16.msra.mxu0 %v2346_v31  ;;  %2189 = vmatprep.mubr.f32.mxu0 %v1414_v3 }
 0x450   : > { %2351 = vmatprep.subr.bf16.mxu0 %v2350_v41 }
 0x453   : > { %2353 = vmatpush3.bf16.msra.mxu0 %v2350_v41 }
 0x454   : > { %2355 = vmatprep.subr.bf16.mxu0 %v2354_v44 }
 0x457   : > { %2357 = vmatpush3.bf16.msra.mxu0 %v2354_v44 }
 0x458   : > { %2359 = vmatprep.subr.bf16.mxu0 %v2358_v47 }
 0x45b   : > { %2361 = vmatpush3.bf16.msra.mxu0 %v2358_v47 }
 0x45c   : > { %2363 = vmatprep.subr.bf16.mxu0 %v2362_v50 }
 0x45f   : > { %2365 = vmatpush3.bf16.msra.mxu0 %v2362_v50 }
 0x460   : > { %2367 = vmatprep.subr.bf16.mxu0 %v2366_v53 }
 0x463   : > { %2369 = vmatpush3.bf16.msra.mxu0 %v2366_v53 }
 0x464   : > { %2371 = vmatprep.subr.bf16.mxu0 %v2370_v4 }
 0x467   : > { %2373 = vmatpush3.bf16.msra.mxu0 %v2370_v4 }
 0x468   : > { %2375 = vmatprep.subr.bf16.mxu0 %v2374_v58 }
 0x46b   : > { %2377 = vmatpush3.bf16.msra.mxu0 %v2374_v58 }
 0x46e   : > { %2190 = vmatmul.mubr.f32.vlgmr.msra.gmra.mrb[10].mxu0 %v2086_v32 }
 0x51d   : > { %v2210_v59 = vpop.f32.mrb[12].mxu1 }
 0x51e   : > { %v1736_v60 = vpop.f32.mrb[13].mxu1 }
 0x541   : > { %v2191_v62 = vpop.f32.mrb[10].mxu0 }
 0x542   : > { %v2394_v63 = vadd.f32 %v2191_v62, %v2121_v33  ;;  %v1639_v2 = vpop.f32.mrb[11].mxu0 }
 0x543   : > { %v2395_v5 = vadd.f32 %v1639_v2, %v1489_v34 }
 0x544   : > { %v1657_v7 = vadd.f32 %v2394_v63, %v1826_v61 }
 0x545   : > { %v1656_v8 = vadd.f32 %v2395_v5, %v1826_v61 }
 0x546   : > { %vm1659_vm5 = vcmp.gt.f32.partialorder %v1657_v7, 0.0  ;;  %v1661_v9 = vmul.f32 0.05, %v1657_v7 }
 0x547   : > { %vm1658_vm6 = vcmp.gt.f32.partialorder %v1656_v8, 0.0  ;;  %v1660_v10 = vmul.f32 0.05, %v1656_v8 }
 0x548   : > { %v1663_v1 = vsel %vm1659_vm5, %v1657_v7, %v1661_v9 }
 0x549   : > { %v1742_v11 = vadd.f32 %v2210_v59, %v1663_v1  ;;  %v1662_v12 = vsel %vm1658_vm6, %v1656_v8, %v1660_v10 }
 0x54a   : > { %v1737_v13 = vadd.f32 %v1736_v60, %v1662_v12 }
 0x54b   : > { %v1746_v14 = vmul.f32 0.5, %v1742_v11 }
 0x54c   : > { %v1745_v6 = vmul.f32 0.5, %v1737_v13 }
 0x54d   : > { %1748 = vst [vmem:[%s548_s18 + $0x8] sm:$0xff] %v1746_v14 }
 0x54e   : > { %1747 = vst [vmem:[%s548_s18] sm:$0xff] %v1745_v6 }
 0x54f PF: > { %s27_s24 = sadd.s32 1, %s2415_s24  }
 0x550   : > { %p24_p4 = scmp.ge.s32.totalorder %s27_s24, 4  }
 0x552   :  { %26 = sbr.rel (!%p24_p4) target bundleno = 3 (0x3), region = 118 }

</bundles_post_ra>
